<compile_context>
chip_gen: v6e
topology: v6e:2x2x1
jax: 0.10.0
libtpu: 0.0.40
codegen_flags: <defaults>
</compile_context>

<pallas_src>
import jax
import jax.numpy as jnp
from jax.experimental import pallas as pl
from jax.experimental.pallas import tpu as pltpu


_VMEM_LIMIT = 32 * 1024 * 1024  # explicit scoped-VMEM limit (safe on v5e/v6e/v7x)


def _round_up(x, k):
    return (x + k - 1) // k * k


def _num_tensorcores():
    """Best-effort TensorCore-per-chip count (v7x: 2, v5e/v6e: 1)."""
    try:
        info = pltpu.get_tpu_info()
        for attr in ("num_cores", "core_count", "num_tensorcores",
                     "tensorcore_count", "cores_per_chip"):
            v = getattr(info, attr, None)
            if v is not None:
                v = int(v)
                if v >= 1:
                    return v
    except Exception:
        pass
    try:
        kind = jax.devices()[0].device_kind.lower()
        if "v7" in kind:
            return 2
    except Exception:
        pass
    return 1


# ----------------------------------------------------------------------------
# Pallas kernels
# ----------------------------------------------------------------------------
def conv_pool_relu_kernel(p_ref, w_ref, b_ref, o_ref):
    """Fused conv (im2col matmul) + bias + 2x2 max-pool + ReLU, channel-major out.

    p_ref: (4, K, TM) bf16 -- 4 = 2x2 pool-window positions; TM on lanes
    w_ref: (Cout, K)  bf16 -- flattened conv weights (cin, kh, kw)
    b_ref: (Cout, 1)  f32
    o_ref: (Cout, TM) f32  -- lane-dense, channel-major output
    """
    w = w_ref[...]
    acc = jnp.dot(w, p_ref[0], preferred_element_type=jnp.float32)
    for j in range(1, 4):  # max over the 2x2 pool window (valid before bias/ReLU)
        acc = jnp.maximum(
            acc, jnp.dot(w, p_ref[j], preferred_element_type=jnp.float32)
        )
    o_ref[...] = jnp.maximum(acc + b_ref[...], 0.0).astype(o_ref.dtype)


def mlp_kernel(x_ref, w1_ref, b1_ref, w2_ref, b2_ref, o_ref):
    """Fused fc1 + ReLU + fc2; the hidden activation never leaves VMEM/vregs."""
    h = jnp.dot(x_ref[...], w1_ref[...], preferred_element_type=jnp.float32)
    h = jnp.maximum(h + b1_ref[...], 0.0)
    o = jnp.dot(h, w2_ref[...], preferred_element_type=jnp.float32) + b2_ref[...]
    o_ref[...] = o.astype(o_ref.dtype)


# ----------------------------------------------------------------------------
# Tile pickers
# ----------------------------------------------------------------------------
def _pick_row_tile(m, tm_max, num_cores):
    """Lane-aligned (multiple of 128) M tile, capped at tm_max (VMEM bound)."""
    m128 = _round_up(m, 128)
    tile = min(tm_max, m128)
    if num_cores > 1:
        # Aim for >= 2 grid steps per TensorCore so each core's pipeline can
        # overlap DMA with compute (1 step/core leaves the DMA fully exposed).
        want = _round_up(-(-m128 // (2 * num_cores)), 128)
        tile = min(tile, max(want, 128))
    return tile


def _pick_mlp_tile(n, num_cores):
    """Row (sublane) tile for the fused MLP; weights stay VMEM-resident."""
    if n < 8 or n % 8 != 0:
        return n  # full-extent block: legal for any n
    if num_cores > 1:
        t = _round_up(-(-n // (2 * num_cores)), 8)
        return min(max(t, 8), 512)
    return min(n, 512)


# ----------------------------------------------------------------------------
# Pallas wrappers
# ----------------------------------------------------------------------------
def conv_pool_relu(p, w_t, b_col, tm_max, num_cores):
    """p: (4, K, M) bf16 -> (Cout, M) f32.  M tiled; ragged tail masked by Pallas."""
    _, k, m = p.shape
    cout = w_t.shape[0]
    tm = _pick_row_tile(m, tm_max, num_cores)
    return pl.pallas_call(
        conv_pool_relu_kernel,
        out_shape=jax.ShapeDtypeStruct((cout, m), jnp.float32),
        grid=(pl.cdiv(m, tm),),
        in_specs=[
            pl.BlockSpec((4, k, tm), lambda i: (0, 0, i)),
            pl.BlockSpec((cout, k), lambda i: (0, 0)),
            pl.BlockSpec((cout, 1), lambda i: (0, 0)),
        ],
        out_specs=pl.BlockSpec((cout, tm), lambda i: (0, i)),
        compiler_params=pltpu.CompilerParams(
            dimension_semantics=("parallel",),
            vmem_limit_bytes=_VMEM_LIMIT,
            # Let XLA fuse the im2col transpose/pad/cast producer into the
            # patch operand (operand 0) so P need not round-trip through HBM.
            allow_input_fusion=[True, False, False],
        ),
    )(p, w_t, b_col)


def mlp(x, w1, b1, w2, b2, num_cores):
    """Fused (x @ w1 + b1).relu() @ w2 + b2.  x:(N,512) w1:(512,256) w2:(256,No)."""
    n, k = x.shape
    nh = w1.shape[1]
    no = w2.shape[1]
    tm = _pick_mlp_tile(n, num_cores)
    return pl.pallas_call(
        mlp_kernel,
        out_shape=jax.ShapeDtypeStruct((n, no), jnp.float32),
        grid=(pl.cdiv(n, tm),),
        in_specs=[
            pl.BlockSpec((tm, k), lambda i: (i, 0)),
            pl.BlockSpec((k, nh), lambda i: (0, 0)),
            pl.BlockSpec((1, nh), lambda i: (0, 0)),
            pl.BlockSpec((nh, no), lambda i: (0, 0)),
            pl.BlockSpec((1, no), lambda i: (0, 0)),
        ],
        out_specs=pl.BlockSpec((tm, no), lambda i: (i, 0)),
        compiler_params=pltpu.CompilerParams(
            dimension_semantics=("parallel",),
            vmem_limit_bytes=_VMEM_LIMIT,
        ),
    )(x, w1, b1, w2, b2)


# ----------------------------------------------------------------------------
# Plain-JAX glue: window-major im2col with 2x2 pooling grouping (channel-major in)
# ----------------------------------------------------------------------------
def im2col_pool_window_major(x_cnhw, kh, kw, k_pad, dtype=jnp.bfloat16):
    """x: (C, N, H, W) channel-major -> (4, k_pad, N*(Ho//2)*(Wo//2)) in `dtype`.

    Axis 0: the 2x2/stride-2 max-pool window.  Axis 1: flattened (cin, kh, kw)
    receptive field (matches W.reshape(Cout, -1)), zero-padded to k_pad.
    Axis 2 (lanes): pooled output position, ordered (n, oh, ow).
    """
    c, n, h, w = x_cnhw.shape
    ho, wo = h - kh + 1, w - kw + 1
    cols = []
    for dh in range(kh):
        for dw in range(kw):
            cols.append(x_cnhw[:, :, dh:dh + ho, dw:dw + wo])  # (C, N, Ho, Wo)
    p = jnp.stack(cols, axis=1)                                # (C, kh*kw, N, Ho, Wo)
    k = c * kh * kw
    p = p.reshape(k, n, ho // 2, 2, wo // 2, 2)                # (K, N, OH, ph, OW, pw)
    p = jnp.transpose(p, (3, 5, 0, 1, 2, 4))                   # (ph, pw, K, N, OH, OW)
    p = p.reshape(4, k, n * (ho // 2) * (wo // 2)).astype(dtype)
    if k_pad > k:
        p = jnp.pad(p, ((0, 0), (0, k_pad - k), (0, 0)))       # zero rows: exact
    return p


# ----------------------------------------------------------------------------
# Model forward (matches PyTorch ModelCNN.forward, eval-mode dropout)
# ----------------------------------------------------------------------------
def model_cnn_forward(params, x):
    """x: (N, 1, 28, 28) float32 NCHW -> logits (N, 10)."""
    w1, b1, w2, b2, wf1, bf1, wf2, bf2 = params
    n = x.shape[0]
    num_cores = _num_tensorcores()

    # conv1 (1->16, 5x5) -> 2x2 maxpool -> ReLU     (dropout: identity in eval)
    k1 = _round_up(1 * 5 * 5, 8)                                # 25 -> 32 (sublane pad only)
    p1 = im2col_pool_window_major(jnp.transpose(x, (1, 0, 2, 3)), 5, 5, k1)
    w1m = jnp.pad(w1.reshape(16, 25), ((0, 0), (0, k1 - 25))).astype(jnp.bfloat16)
    h1 = conv_pool_relu(p1, w1m, b1.reshape(16, 1), tm_max=2048,
                        num_cores=num_cores)                    # (16, N*12*12)
    h1 = h1.reshape(16, n, 12, 12)                              # already (C, N, H, W)

    # conv2 (16->32, 5x5) -> 2x2 maxpool -> ReLU
    k2 = 16 * 5 * 5                                             # 400: multiple of 8, no pad
    p2 = im2col_pool_window_major(h1, 5, 5, k2)
    w2m = w2.reshape(32, 400).astype(jnp.bfloat16)
    h2 = conv_pool_relu(p2, w2m, b2.reshape(32, 1), tm_max=1024,
                        num_cores=num_cores)                    # (32, N*4*4)

    # flatten exactly like PyTorch's h2.view(-1, 512) on an NCHW tensor
    h2 = h2.reshape(32, n, 4, 4).transpose(1, 0, 2, 3).reshape(n, 512)

    # fc1 (512->256) + ReLU + fc2 (256->10), fused; fc2 cols zero-padded 10->128
    no = _round_up(10, 128)
    wf2p = jnp.pad(wf2.T, ((0, 0), (0, no - 10)))               # (256, 128)
    bf2p = jnp.pad(bf2.reshape(1, -1), ((0, 0), (0, no - 10)))  # (1, 128)
    logits = mlp(h2, wf1.T, bf1.reshape(1, -1), wf2p, bf2p, num_cores)
    return logits[:, :10]


# ----------------------------------------------------------------------------
# Deterministic parameter init (PyTorch-default-style uniform, shapes from __init__)
# ----------------------------------------------------------------------------
def init_params(key):
    ks = jax.random.split(key, 8)

    def u(k, shape, fan_in):
        bound = 1.0 / (fan_in ** 0.5)
        return jax.random.uniform(k, shape, jnp.float32, -bound, bound)

    w1 = u(ks[0], (16, 1, 5, 5), 25);    b1 = u(ks[1], (16,), 25)
    w2 = u(ks[2], (32, 16, 5, 5), 400);  b2 = u(ks[3], (32,), 400)
    wf1 = u(ks[4], (256, 512), 512);     bf1 = u(ks[5], (256,), 512)
    wf2 = u(ks[6], (10, 256), 256);      bf2 = u(ks[7], (10,), 256)
    return (w1, b1, w2, b2, wf1, bf1, wf2, bf2)


if __name__ == "__main__":
    key = jax.random.PRNGKey(0)
    pkey, xkey = jax.random.split(key)
    params = init_params(pkey)
    # The module's flatten-to-512 implies 28x28 single-channel inputs (MNIST).
    x = jax.random.normal(xkey, (2, 1, 28, 28), dtype=jnp.float32)

    logits = jax.jit(model_cnn_forward)(params, x)
    logits = jax.block_until_ready(logits)

    assert logits.shape == (2, 10), logits.shape
    assert bool(jnp.all(jnp.isfinite(logits)))
    print("KERNEL_OK")
</pallas_src>

<mosaic_0001>
module attributes {stable_mosaic.version = 11 : i64} {
  func.func @conv_pool_relu_kernel(%arg0: i32, %arg1: memref<4x32x384xbf16, #tpu.memory_space<vmem>>, %arg2: memref<16x32xbf16, #tpu.memory_space<vmem>>, %arg3: memref<16x1xf32, #tpu.memory_space<vmem>>, %arg4: memref<16x384xf32, #tpu.memory_space<vmem>>) attributes {dimension_semantics = [#tpu.dimension_semantics<parallel>], iteration_bounds = array<i64: 1>, scalar_prefetch = 0 : i64, scratch_operands = 0 : i64, tpu.core_type = #tpu.core_type<tc>, window_params = [{transform_indices = @transform_0, window_bounds = array<i64: 4, 32, 384>}, {pipeline_mode = #tpu.pipeline_mode<synchronous>, transform_indices = @transform_1, window_bounds = array<i64: 16, 32>}, {pipeline_mode = #tpu.pipeline_mode<synchronous>, transform_indices = @transform_2, window_bounds = array<i64: 16, 1>}, {transform_indices = @transform_3, window_bounds = array<i64: 16, 384>}]} {
    %c0 = arith.constant 0 : index
    %c0_0 = arith.constant 0 : index
    %0 = vector.load %arg2[%c0, %c0_0] : memref<16x32xbf16, #tpu.memory_space<vmem>>, vector<16x32xbf16>
    %c0_1 = arith.constant 0 : index
    %c0_2 = arith.constant 0 : index
    %c0_3 = arith.constant 0 : index
    %1 = vector.load %arg1[%c0_1, %c0_2, %c0_3] : memref<4x32x384xbf16, #tpu.memory_space<vmem>>, vector<1x32x384xbf16>
    %2 = vector.shape_cast %1 : vector<1x32x384xbf16> to vector<32x384xbf16>
    %cst = arith.constant dense<0.000000e+00> : vector<16x384xf32>
    %3 = tpu.matmul %0, %2, %cst {dimension_numbers = #tpu.dot_dimension_numbers<[1], [0], [0], [1], [0, 0, 1, 1], [], []>} : vector<16x32xbf16>, vector<32x384xbf16>, vector<16x384xf32> -> vector<16x384xf32>
    %c1 = arith.constant 1 : index
    %c0_4 = arith.constant 0 : index
    %c0_5 = arith.constant 0 : index
    %4 = vector.load %arg1[%c1, %c0_4, %c0_5] : memref<4x32x384xbf16, #tpu.memory_space<vmem>>, vector<1x32x384xbf16>
    %5 = vector.shape_cast %4 : vector<1x32x384xbf16> to vector<32x384xbf16>
    %cst_6 = arith.constant dense<0.000000e+00> : vector<16x384xf32>
    %6 = tpu.matmul %0, %5, %cst_6 {dimension_numbers = #tpu.dot_dimension_numbers<[1], [0], [0], [1], [0, 0, 1, 1], [], []>} : vector<16x32xbf16>, vector<32x384xbf16>, vector<16x384xf32> -> vector<16x384xf32>
    %7 = arith.maximumf %3, %6 : vector<16x384xf32>
    %c2 = arith.constant 2 : index
    %c0_7 = arith.constant 0 : index
    %c0_8 = arith.constant 0 : index
    %8 = vector.load %arg1[%c2, %c0_7, %c0_8] : memref<4x32x384xbf16, #tpu.memory_space<vmem>>, vector<1x32x384xbf16>
    %9 = vector.shape_cast %8 : vector<1x32x384xbf16> to vector<32x384xbf16>
    %cst_9 = arith.constant dense<0.000000e+00> : vector<16x384xf32>
    %10 = tpu.matmul %0, %9, %cst_9 {dimension_numbers = #tpu.dot_dimension_numbers<[1], [0], [0], [1], [0, 0, 1, 1], [], []>} : vector<16x32xbf16>, vector<32x384xbf16>, vector<16x384xf32> -> vector<16x384xf32>
    %11 = arith.maximumf %7, %10 : vector<16x384xf32>
    %c3 = arith.constant 3 : index
    %c0_10 = arith.constant 0 : index
    %c0_11 = arith.constant 0 : index
    %12 = vector.load %arg1[%c3, %c0_10, %c0_11] : memref<4x32x384xbf16, #tpu.memory_space<vmem>>, vector<1x32x384xbf16>
    %13 = vector.shape_cast %12 : vector<1x32x384xbf16> to vector<32x384xbf16>
    %cst_12 = arith.constant dense<0.000000e+00> : vector<16x384xf32>
    %14 = tpu.matmul %0, %13, %cst_12 {dimension_numbers = #tpu.dot_dimension_numbers<[1], [0], [0], [1], [0, 0, 1, 1], [], []>} : vector<16x32xbf16>, vector<32x384xbf16>, vector<16x384xf32> -> vector<16x384xf32>
    %15 = arith.maximumf %11, %14 : vector<16x384xf32>
    %c0_13 = arith.constant 0 : index
    %c0_14 = arith.constant 0 : index
    %16 = vector.load %arg3[%c0_13, %c0_14] : memref<16x1xf32, #tpu.memory_space<vmem>>, vector<16x1xf32>
    %17 = vector.broadcast %16 : vector<16x1xf32> to vector<16x384xf32>
    %18 = arith.addf %15, %17 : vector<16x384xf32>
    %cst_15 = arith.constant 0.000000e+00 : f32
    %19 = vector.broadcast %cst_15 : f32 to vector<16x384xf32>
    %20 = arith.maximumf %18, %19 : vector<16x384xf32>
    %c0_16 = arith.constant 0 : index
    %c0_17 = arith.constant 0 : index
    %21 = vector.load %arg4[%c0_16, %c0_17] : memref<16x384xf32, #tpu.memory_space<vmem>>, vector<16x384xf32>
    tpu.vector_store %arg4[%c0_16, %c0_17], %20 {strides = array<i32>} : memref<16x384xf32, #tpu.memory_space<vmem>>, vector<16x384xf32>,
    return
  }
  func.func @transform_0(%arg0: i32) -> (i32, i32, i32) {
    %c0_i32 = arith.constant 0 : i32
    %c0_i32_0 = arith.constant 0 : i32
    %c0_i32_1 = arith.constant 0 : i32
    return %c0_i32, %c0_i32_0, %arg0 : i32, i32, i32
  }
  func.func @transform_1(%arg0: i32) -> (i32, i32) {
    %c0_i32 = arith.constant 0 : i32
    %c0_i32_0 = arith.constant 0 : i32
    %c0_i32_1 = arith.constant 0 : i32
    return %c0_i32, %c0_i32_0 : i32, i32
  }
  func.func @transform_2(%arg0: i32) -> (i32, i32) {
    %c0_i32 = arith.constant 0 : i32
    %c0_i32_0 = arith.constant 0 : i32
    %c0_i32_1 = arith.constant 0 : i32
    return %c0_i32, %c0_i32_0 : i32, i32
  }
  func.func @transform_3(%arg0: i32) -> (i32, i32) {
    %c0_i32 = arith.constant 0 : i32
    %c0_i32_0 = arith.constant 0 : i32
    return %c0_i32, %arg0 : i32, i32
  }
}

module attributes {stable_mosaic.version = 11 : i64} {
  func.func @conv_pool_relu_kernel(%arg0: i32, %arg1: memref<4x400x128xbf16, #tpu.memory_space<vmem>>, %arg2: memref<32x400xbf16, #tpu.memory_space<vmem>>, %arg3: memref<32x1xf32, #tpu.memory_space<vmem>>, %arg4: memref<32x128xf32, #tpu.memory_space<vmem>>) attributes {dimension_semantics = [#tpu.dimension_semantics<parallel>], iteration_bounds = array<i64: 1>, scalar_prefetch = 0 : i64, scratch_operands = 0 : i64, tpu.core_type = #tpu.core_type<tc>, window_params = [{transform_indices = @transform_0, window_bounds = array<i64: 4, 400, 128>}, {pipeline_mode = #tpu.pipeline_mode<synchronous>, transform_indices = @transform_1, window_bounds = array<i64: 32, 400>}, {pipeline_mode = #tpu.pipeline_mode<synchronous>, transform_indices = @transform_2, window_bounds = array<i64: 32, 1>}, {transform_indices = @transform_3, window_bounds = array<i64: 32, 128>}]} {
    %c0 = arith.constant 0 : index
    %c0_0 = arith.constant 0 : index
    %0 = vector.load %arg2[%c0, %c0_0] : memref<32x400xbf16, #tpu.memory_space<vmem>>, vector<32x400xbf16>
    %c0_1 = arith.constant 0 : index
    %c0_2 = arith.constant 0 : index
    %c0_3 = arith.constant 0 : index
    %1 = vector.load %arg1[%c0_1, %c0_2, %c0_3] : memref<4x400x128xbf16, #tpu.memory_space<vmem>>, vector<1x400x128xbf16>
    %2 = vector.shape_cast %1 : vector<1x400x128xbf16> to vector<400x128xbf16>
    %cst = arith.constant dense<0.000000e+00> : vector<32x128xf32>
    %3 = tpu.matmul %0, %2, %cst {dimension_numbers = #tpu.dot_dimension_numbers<[1], [0], [0], [1], [0, 0, 1, 1], [], []>} : vector<32x400xbf16>, vector<400x128xbf16>, vector<32x128xf32> -> vector<32x128xf32>
    %c1 = arith.constant 1 : index
    %c0_4 = arith.constant 0 : index
    %c0_5 = arith.constant 0 : index
    %4 = vector.load %arg1[%c1, %c0_4, %c0_5] : memref<4x400x128xbf16, #tpu.memory_space<vmem>>, vector<1x400x128xbf16>
    %5 = vector.shape_cast %4 : vector<1x400x128xbf16> to vector<400x128xbf16>
    %cst_6 = arith.constant dense<0.000000e+00> : vector<32x128xf32>
    %6 = tpu.matmul %0, %5, %cst_6 {dimension_numbers = #tpu.dot_dimension_numbers<[1], [0], [0], [1], [0, 0, 1, 1], [], []>} : vector<32x400xbf16>, vector<400x128xbf16>, vector<32x128xf32> -> vector<32x128xf32>
    %7 = arith.maximumf %3, %6 : vector<32x128xf32>
    %c2 = arith.constant 2 : index
    %c0_7 = arith.constant 0 : index
    %c0_8 = arith.constant 0 : index
    %8 = vector.load %arg1[%c2, %c0_7, %c0_8] : memref<4x400x128xbf16, #tpu.memory_space<vmem>>, vector<1x400x128xbf16>
    %9 = vector.shape_cast %8 : vector<1x400x128xbf16> to vector<400x128xbf16>
    %cst_9 = arith.constant dense<0.000000e+00> : vector<32x128xf32>
    %10 = tpu.matmul %0, %9, %cst_9 {dimension_numbers = #tpu.dot_dimension_numbers<[1], [0], [0], [1], [0, 0, 1, 1], [], []>} : vector<32x400xbf16>, vector<400x128xbf16>, vector<32x128xf32> -> vector<32x128xf32>
    %11 = arith.maximumf %7, %10 : vector<32x128xf32>
    %c3 = arith.constant 3 : index
    %c0_10 = arith.constant 0 : index
    %c0_11 = arith.constant 0 : index
    %12 = vector.load %arg1[%c3, %c0_10, %c0_11] : memref<4x400x128xbf16, #tpu.memory_space<vmem>>, vector<1x400x128xbf16>
    %13 = vector.shape_cast %12 : vector<1x400x128xbf16> to vector<400x128xbf16>
    %cst_12 = arith.constant dense<0.000000e+00> : vector<32x128xf32>
    %14 = tpu.matmul %0, %13, %cst_12 {dimension_numbers = #tpu.dot_dimension_numbers<[1], [0], [0], [1], [0, 0, 1, 1], [], []>} : vector<32x400xbf16>, vector<400x128xbf16>, vector<32x128xf32> -> vector<32x128xf32>
    %15 = arith.maximumf %11, %14 : vector<32x128xf32>
    %c0_13 = arith.constant 0 : index
    %c0_14 = arith.constant 0 : index
    %16 = vector.load %arg3[%c0_13, %c0_14] : memref<32x1xf32, #tpu.memory_space<vmem>>, vector<32x1xf32>
    %17 = vector.broadcast %16 : vector<32x1xf32> to vector<32x128xf32>
    %18 = arith.addf %15, %17 : vector<32x128xf32>
    %cst_15 = arith.constant 0.000000e+00 : f32
    %19 = vector.broadcast %cst_15 : f32 to vector<32x128xf32>
    %20 = arith.maximumf %18, %19 : vector<32x128xf32>
    %c0_16 = arith.constant 0 : index
    %c0_17 = arith.constant 0 : index
    %21 = vector.load %arg4[%c0_16, %c0_17] : memref<32x128xf32, #tpu.memory_space<vmem>>, vector<32x128xf32>
    tpu.vector_store %arg4[%c0_16, %c0_17], %20 {strides = array<i32>} : memref<32x128xf32, #tpu.memory_space<vmem>>, vector<32x128xf32>,
    return
  }
  func.func @transform_0(%arg0: i32) -> (i32, i32, i32) {
    %c0_i32 = arith.constant 0 : i32
    %c0_i32_0 = arith.constant 0 : i32
    %c0_i32_1 = arith.constant 0 : i32
    return %c0_i32, %c0_i32_0, %arg0 : i32, i32, i32
  }
  func.func @transform_1(%arg0: i32) -> (i32, i32) {
    %c0_i32 = arith.constant 0 : i32
    %c0_i32_0 = arith.constant 0 : i32
    %c0_i32_1 = arith.constant 0 : i32
    return %c0_i32, %c0_i32_0 : i32, i32
  }
  func.func @transform_2(%arg0: i32) -> (i32, i32) {
    %c0_i32 = arith.constant 0 : i32
    %c0_i32_0 = arith.constant 0 : i32
    %c0_i32_1 = arith.constant 0 : i32
    return %c0_i32, %c0_i32_0 : i32, i32
  }
  func.func @transform_3(%arg0: i32) -> (i32, i32) {
    %c0_i32 = arith.constant 0 : i32
    %c0_i32_0 = arith.constant 0 : i32
    return %c0_i32, %arg0 : i32, i32
  }
}

module attributes {stable_mosaic.version = 11 : i64} {
  func.func @mlp_kernel(%arg0: i32, %arg1: memref<2x512xf32, #tpu.memory_space<vmem>>, %arg2: memref<512x256xf32, #tpu.memory_space<vmem>>, %arg3: memref<1x256xf32, #tpu.memory_space<vmem>>, %arg4: memref<256x128xf32, #tpu.memory_space<vmem>>, %arg5: memref<1x128xf32, #tpu.memory_space<vmem>>, %arg6: memref<2x128xf32, #tpu.memory_space<vmem>>) attributes {dimension_semantics = [#tpu.dimension_semantics<parallel>], iteration_bounds = array<i64: 1>, scalar_prefetch = 0 : i64, scratch_operands = 0 : i64, tpu.core_type = #tpu.core_type<tc>, window_params = [{transform_indices = @transform_0, window_bounds = array<i64: 2, 512>}, {pipeline_mode = #tpu.pipeline_mode<synchronous>, transform_indices = @transform_1, window_bounds = array<i64: 512, 256>}, {pipeline_mode = #tpu.pipeline_mode<synchronous>, transform_indices = @transform_2, window_bounds = array<i64: 1, 256>}, {pipeline_mode = #tpu.pipeline_mode<synchronous>, transform_indices = @transform_3, window_bounds = array<i64: 256, 128>}, {pipeline_mode = #tpu.pipeline_mode<synchronous>, transform_indices = @transform_4, window_bounds = array<i64: 1, 128>}, {transform_indices = @transform_5, window_bounds = array<i64: 2, 128>}]} {
    %c0 = arith.constant 0 : index
    %c0_0 = arith.constant 0 : index
    %0 = vector.load %arg1[%c0, %c0_0] : memref<2x512xf32, #tpu.memory_space<vmem>>, vector<2x512xf32>
    %c0_1 = arith.constant 0 : index
    %c0_2 = arith.constant 0 : index
    %1 = vector.load %arg2[%c0_1, %c0_2] : memref<512x256xf32, #tpu.memory_space<vmem>>, vector<512x256xf32>
    %cst = arith.constant dense<0.000000e+00> : vector<2x256xf32>
    %2 = tpu.matmul %0, %1, %cst {dimension_numbers = #tpu.dot_dimension_numbers<[1], [0], [0], [1], [0, 0, 1, 1], [], []>} : vector<2x512xf32>, vector<512x256xf32>, vector<2x256xf32> -> vector<2x256xf32>
    %c0_3 = arith.constant 0 : index
    %c0_4 = arith.constant 0 : index
    %3 = vector.load %arg3[%c0_3, %c0_4] : memref<1x256xf32, #tpu.memory_space<vmem>>, vector<1x256xf32>
    %4 = vector.broadcast %3 : vector<1x256xf32> to vector<2x256xf32>
    %5 = arith.addf %2, %4 : vector<2x256xf32>
    %cst_5 = arith.constant 0.000000e+00 : f32
    %6 = vector.broadcast %cst_5 : f32 to vector<2x256xf32>
    %7 = arith.maximumf %5, %6 : vector<2x256xf32>
    %c0_6 = arith.constant 0 : index
    %c0_7 = arith.constant 0 : index
    %8 = vector.load %arg4[%c0_6, %c0_7] : memref<256x128xf32, #tpu.memory_space<vmem>>, vector<256x128xf32>
    %cst_8 = arith.constant dense<0.000000e+00> : vector<2x128xf32>
    %9 = tpu.matmul %7, %8, %cst_8 {dimension_numbers = #tpu.dot_dimension_numbers<[1], [0], [0], [1], [0, 0, 1, 1], [], []>} : vector<2x256xf32>, vector<256x128xf32>, vector<2x128xf32> -> vector<2x128xf32>
    %c0_9 = arith.constant 0 : index
    %c0_10 = arith.constant 0 : index
    %10 = vector.load %arg5[%c0_9, %c0_10] : memref<1x128xf32, #tpu.memory_space<vmem>>, vector<1x128xf32>
    %11 = vector.broadcast %10 : vector<1x128xf32> to vector<2x128xf32>
    %12 = arith.addf %9, %11 : vector<2x128xf32>
    %c0_11 = arith.constant 0 : index
    %c0_12 = arith.constant 0 : index
    %13 = vector.load %arg6[%c0_11, %c0_12] : memref<2x128xf32, #tpu.memory_space<vmem>>, vector<2x128xf32>
    tpu.vector_store %arg6[%c0_11, %c0_12], %12 {strides = array<i32>} : memref<2x128xf32, #tpu.memory_space<vmem>>, vector<2x128xf32>,
    return
  }
  func.func @transform_0(%arg0: i32) -> (i32, i32) {
    %c0_i32 = arith.constant 0 : i32
    %c0_i32_0 = arith.constant 0 : i32
    return %arg0, %c0_i32 : i32, i32
  }
  func.func @transform_1(%arg0: i32) -> (i32, i32) {
    %c0_i32 = arith.constant 0 : i32
    %c0_i32_0 = arith.constant 0 : i32
    %c0_i32_1 = arith.constant 0 : i32
    return %c0_i32, %c0_i32_0 : i32, i32
  }
  func.func @transform_2(%arg0: i32) -> (i32, i32) {
    %c0_i32 = arith.constant 0 : i32
    %c0_i32_0 = arith.constant 0 : i32
    %c0_i32_1 = arith.constant 0 : i32
    return %c0_i32, %c0_i32_0 : i32, i32
  }
  func.func @transform_3(%arg0: i32) -> (i32, i32) {
    %c0_i32 = arith.constant 0 : i32
    %c0_i32_0 = arith.constant 0 : i32
    %c0_i32_1 = arith.constant 0 : i32
    return %c0_i32, %c0_i32_0 : i32, i32
  }
  func.func @transform_4(%arg0: i32) -> (i32, i32) {
    %c0_i32 = arith.constant 0 : i32
    %c0_i32_0 = arith.constant 0 : i32
    %c0_i32_1 = arith.constant 0 : i32
    return %c0_i32, %c0_i32_0 : i32, i32
  }
  func.func @transform_5(%arg0: i32) -> (i32, i32) {
    %c0_i32 = arith.constant 0 : i32
    %c0_i32_0 = arith.constant 0 : i32
    return %arg0, %c0_i32 : i32, i32
  }
}

</mosaic_0001>

<bundles_post_ra>
// kernel: model_cnn_forward.6
= control target key start
LH: loop header
LB: loop body
LE: loop exit
PB: predicated region body
PF: predicated region fallthrough
CT: control target
= control target key end

     0   :  { %s2133_s0 = inlined_call_operand.vmem [shape: bf16[16,32], index: 0, kind: input, shape index: {}]   ;;  %s2134_s1 = inlined_call_operand.vmem [shape: f32[16,1], index: 1, kind: input, shape index: {}]   ;;  %s2135_s2 = inlined_call_operand.vmem [shape: bf16[4,25,288], index: 2, kind: input, shape index: {}]   ;;  %s2136_s3 = inlined_call_operand.<no memory space> [shape: bf16[], index: 3, kind: input, shape index: {}]   ;;  %s2137_s4 = inlined_call_operand.vmem [shape: f32[16,288], index: 4, kind: output, shape index: {}]  }
   0x1   :  { %v9_v0 = vstv %s2136_s3 }
   0x2   :  { %v1841_v1 = vunpack.i.l.bf16 %v9_v0 }
   0x3   :  { %v65_v2 = vlaneseq  ;;  %v1846_v3 = vld [vmem:[%s2135_s2 + $0x18] sm:$0xff]   ;;  %v1609_v4 = vld [vmem:[%s2135_s2 + $0x24] sm:$0xff]   ;;  %v1810_v5 = vmov 0.0   ;;  %v1608_v6 = vld [vmem:[%s2135_s2 + $0x20] ss:$12 sps:$4 sm:$0xff]   ;;  %v1811_v12 = vmov 0  }
   0x4   :  { %1755 = vmatprep.subr.bf16.mxu1 %v1810_v5  ;;  %v20_v7 = vld [vmem:[%s2135_s2] sm:$0xff]   ;;  %v1602_v10 = vld [vmem:[%s2135_s2 + $0x8] sm:$0xff]   ;;  %v1604_v11 = vld [vmem:[%s2135_s2 + $0x10] sm:$0xf]  ;;  %1122 = vmatprep.mubr.bf16.mxu0 %v1811_v12  ;;  %vm1812_vm0 = vmmov 0   ;;  %v200_v13 = vunpack.c.l.bf16 %v1609_v4  ;;  %v228_v14 = vunpack.c.h.bf16 %v1609_v4  ;;  %v172_v15 = vunpack.c.l.bf16 %v1608_v6 }
   0x5   :  { %v66_v8 = vand.u32 127, %v65_v2  ;;  %v203_v9 = vshrl.u32 %v65_v2, 7  ;;  %36 = vst [vmem:[#allocation7] sm:$0xff] %v20_v7   ;;  %1759 = vmatprep.mubr.msk.bf16.mxu1 %vm1812_vm0, %v1810_v5  ;;  %v256_v16 = vunpack.c.h.bf16 %v1608_v6  ;;  %112 = vst [vmem:[#allocation7 + $0x10] sm:$0xf] %v1604_v11  ;;  %1790 = vset.pattern.permute.xlu0 %v1811_v12  ;;  %v1878_v20 = vld [vmem:[%s2135_s2 + $0x48] sm:$0xff]   ;;  %v58_v21 = vunpack.c.l.bf16 %v1602_v10 }
   0x6   :  { %v1605_v17 = vld [vmem:[%s2135_s2 + $0x14] ss:$60 sps:$4 sm:$0xff]   ;;  %v1683_v22 = vunpack.c.h.bf16 %v1602_v10  ;;  %v1623_v28 = vld [vmem:[%s2135_s2 + $0x44] ss:$24 sps:$4 sm:$0xff]   ;;  %v1616_v35 = vld [vmem:[%s2135_s2 + $0x40] sm:$0xf] }
   0x7   :  { %v1871_v18 = vadd.s32 256, %v66_v8  ;;  %v1873_v19 = vadd.s32 24, %v203_v9  ;;  %v115_v23 = vunpack.c.l.bf16 %v1605_v17  ;;  %v1621_v24 = vld [vmem:[%s2135_s2 + $0x54] sm:$0xff]   ;;  %v427_v25 = vunpack.c.h.bf16 %v1605_v17  ;;  %367 = vst [vmem:[#allocation7 + $0x40] sm:$0xf] %v1616_v35  ;;  %v1633_v45 = vld [vmem:[%s2135_s2 + $0x84] sm:$0xff]  }
   0x8   :  { %v455_v26 = vunpack.c.l.bf16 %v1621_v24  ;;  %v483_v27 = vunpack.c.h.bf16 %v1621_v24  ;;  %v1903_v33 = vld [vmem:[%s2135_s2 + $0x30] sm:$0xff]   ;;  %v1614_v34 = vld [vmem:[%s2135_s2 + $0x38] sm:$0xff]   ;;  %v1938_v46 = vld [vmem:[%s2135_s2 + $0x80] ss:$12 sps:$4 sm:$0xff]   ;;  %v511_v54 = vunpack.c.h.bf16 %v1623_v28  ;;  %v370_v59 = vunpack.c.l.bf16 %v1623_v28 }
   0x9   :  { %vm68_vm1 = vcmp.lt.s32.totalorder %v1871_v18, 288  ;;  %vm205_vm2 = vcmp.lt.s32.totalorder %v1873_v19, 25  ;;  %v1920_v40 = vld [vmem:[%s2135_s2 + $0x78] sm:$0xff]   ;;  %v1948_v51 = vld [vmem:[%s2135_s2 + $0x60] sm:$0xff]   ;;  %v313_v55 = vunpack.c.l.bf16 %v1614_v34  ;;  %v1628_v56 = vld [vmem:[%s2135_s2 + $0x70] sm:$0xf]  ;;  %v1698_v58 = vunpack.c.h.bf16 %v1614_v34 }
   0xa   :  { %v206_v29 = vsel %vm205_vm2, %v200_v13, %v1841_v1  ;;  %v234_v30 = vsel %vm205_vm2, %v228_v14, %v1841_v1  ;;  %v183_v31 = vsel %vm68_vm1, %v172_v15, %v1841_v1  ;;  %v262_v32 = vsel %vm205_vm2, %v256_v16, %v1841_v1  ;;  %622 = vst [vmem:[#allocation7 + $0x70] sm:$0xf] %v1628_v56  ;;  %v1961_v61 = vld [vmem:[%s2135_s2 + $0xa8] sm:$0xff]   ;;  %v1976_v6 = vld [vmem:[%s2135_s2 + $0x74] ss:$60 sps:$4 sm:$0xff]  }
   0xb   :  { %v213_v36 = vpack.c.bf16 %v1810_v5, %v206_v29  ;;  %v241_v37 = vpack.c.bf16 %v1810_v5, %v234_v30  ;;  %v185_v38 = vpack.c.bf16 %v1810_v5, %v183_v31  ;;  %v267_v39 = vsel %vm68_vm1, %v262_v32, %v1841_v1  ;;  %v1626_v4 = vld [vmem:[%s2135_s2 + $0x68] sm:$0xff]   ;;  %v1645_v11 = vld [vmem:[%s2135_s2 + $0xb4] sm:$0xff]   ;;  %v1647_v32 = vld [vmem:[%s2135_s2 + $0xa4] ss:$24 sps:$4 sm:$0xff]  }
   0xc   :  { %v269_v41 = vpack.c.bf16 %v1810_v5, %v267_v39  ;;  %v69_v42 = vsel %vm68_vm1, %v58_v21, %v1841_v1  ;;  %v126_v43 = vsel %vm68_vm1, %v115_v23, %v1841_v1  ;;  %v461_v44 = vsel %vm205_vm2, %v455_v26, %v1841_v1  ;;  %v1993_v13 = vld [vmem:[%s2135_s2 + $0x90] sm:$0xff]   ;;  %v1640_v21 = vld [vmem:[%s2135_s2 + $0xa0] sm:$0xf]  ;;  %v1638_v39 = vld [vmem:[%s2135_s2 + $0x98] sm:$0xff]  }
   0xd   :  { %216 = vst [vmem:[#allocation7 + $0x24] sm:$0xf] %v213_v36  ;;  %244 = vst [vmem:[#allocation7 + $0x28] sm:$0xf] %v241_v37  ;;  %v1684_v47 = vpack.c.bf16 %v1683_v22, %v69_v42  ;;  %v128_v48 = vpack.c.bf16 %v1810_v5, %v126_v43  ;;  %v468_v49 = vpack.c.bf16 %v1810_v5, %v461_v44  ;;  %v710_v60 = vunpack.c.l.bf16 %v1633_v45  ;;  %v1567_v22 = vld [vmem:[%s2134_s1] sm:$0xff] }
   0xe   :  { %188 = vst [vmem:[#allocation7 + $0x20] sm:$0xf] %v185_v38  ;;  %v489_v50 = vsel %vm205_vm2, %v483_v27, %v1841_v1  ;;  %272 = vst [vmem:[#allocation7 + $0x2c] sm:$0xf] %v269_v41  ;;  %v438_v53 = vsel %vm68_vm1, %v427_v25, %v1841_v1  ;;  %v517_v62 = vsel %vm205_vm2, %v511_v54, %v1841_v1  ;;  %v738_v0 = vunpack.c.h.bf16 %v1633_v45  ;;  %v1793_v41 = vld [vmem:[#allocation7 + $0x4] ss:$12 sps:$4 sm:$0xff]  }
   0xf   :  { %v496_v52 = vpack.c.bf16 %v1810_v5, %v489_v50  ;;  %1685 = vst [vmem:[#allocation7 + $0x8] sm:$0xff] %v1684_v47   ;;  %131 = vst [vmem:[#allocation7 + $0x14] sm:$0xf] %v128_v48  ;;  %v440_v57 = vpack.c.bf16 %v1810_v5, %v438_v53  ;;  %v324_v63 = vsel %vm68_vm1, %v313_v55, %v1841_v1  ;;  %v682_v2 = vunpack.c.l.bf16 %v1938_v46  ;;  %v1568_v45 = vld [vmem:[%s2134_s1 + $0x8] sm:$0xff] }
  0x10   :  { %471 = vst [vmem:[#allocation7 + $0x54] sm:$0xf] %v468_v49  ;;  %v522_v7 = vsel %vm68_vm1, %v517_v62, %v1841_v1  ;;  %v1699_v8 = vpack.c.bf16 %v1698_v58, %v324_v63  ;;  %v381_v9 = vsel %vm68_vm1, %v370_v59, %v1841_v1  ;;  %v716_v10 = vsel %vm205_vm2, %v710_v60, %v1841_v1  ;;  %v2052_v62 = vld [vmem:[%s2133_s0] sm:$0xff]  }
  0x11   :  { %499 = vst [vmem:[#allocation7 + $0x58] sm:$0xf] %v496_v52  ;;  %443 = vst [vmem:[#allocation7 + $0x50] sm:$0xf] %v440_v57  ;;  %v524_v14 = vpack.c.bf16 %v1810_v5, %v522_v7  ;;  %v383_v15 = vpack.c.bf16 %v1810_v5, %v381_v9  ;;  %v723_v16 = vpack.c.bf16 %v1810_v5, %v716_v10  ;;  %v766_v25 = vunpack.c.h.bf16 %v1938_v46 }
  0x12   :  { %v744_v17 = vsel %vm205_vm2, %v738_v0, %v1841_v1  ;;  %1700 = vst [vmem:[#allocation7 + $0x38] sm:$0xff] %v1699_v8   ;;  %v693_v24 = vsel %vm68_vm1, %v682_v2, %v1841_v1  ;;  %v568_v26 = vunpack.c.l.bf16 %v1626_v4  ;;  %877 = vst [vmem:[#allocation7 + $0xa0] sm:$0xf] %v1640_v21  ;;  %1571 = vperm.xlu0 %1790, %v1567_v22   ;;  %v1713_v29 = vunpack.c.h.bf16 %v1626_v4 }
  0x13   :  { %v751_v23 = vpack.c.bf16 %v1810_v5, %v744_v17  ;;  %527 = vst [vmem:[#allocation7 + $0x5c] sm:$0xf] %v524_v14  ;;  %386 = vst [vmem:[#allocation7 + $0x44] sm:$0xf] %v383_v15  ;;  %v695_v28 = vpack.c.bf16 %v1810_v5, %v693_v24  ;;  %v625_v30 = vunpack.c.l.bf16 %v1976_v6  ;;  %v965_v31 = vunpack.c.l.bf16 %v1645_v11 }
  0x14   :  { %v1047_v27 = vld [vmem:[#allocation7 + $0x24] sm:$0xff]  ;;  %726 = vst [vmem:[#allocation7 + $0x84] sm:$0xf] %v723_v16  ;;  %v772_v37 = vsel %vm205_vm2, %v766_v25, %v1841_v1  ;;  %v579_v38 = vsel %vm68_vm1, %v568_v26, %v1841_v1  ;;  %v993_v50 = vunpack.c.h.bf16 %v1645_v11  ;;  %v937_v54 = vunpack.c.h.bf16 %v1976_v6 }
  0x15   :  { %v1653_v34 = vcombine.high %v1846_v3, %v1047_v27  ;;  %v1652_v35 = vcombine.low %v1846_v3, %v1047_v27  ;;  %v1792_v36 = vld [vmem:[#allocation7 + $0x20] ss:$12 sps:$4 sm:$0xff]   ;;  %754 = vst [vmem:[#allocation7 + $0x88] sm:$0xf] %v751_v23  ;;  %698 = vst [vmem:[#allocation7 + $0x80] sm:$0xf] %v695_v28  ;;  %v777_v3 = vsel %vm68_vm1, %v772_v37, %v1841_v1  ;;  %v1021_v55 = vunpack.c.h.bf16 %v1647_v32 }
  0x16   :  { %v1714_v42 = vpack.c.bf16 %v1713_v29, %v579_v38  ;;  %v636_v43 = vsel %vm68_vm1, %v625_v30, %v1841_v1  ;;  %v971_v44 = vsel %vm205_vm2, %v965_v31, %v1841_v1  ;;  %1756 = vmatpush3.bf16.msra.mxu1 %v1792_v36  ;;  %v1796_v46 = vld [vmem:[#allocation7 + $0x8] ss:$12 sps:$4 sm:$0xff]   ;;  %v779_v47 = vpack.c.bf16 %v1810_v5, %v777_v3  ;;  %v1795_v52 = vld [vmem:[#allocation7] ss:$12 sps:$4 sm:$0xff]  }
  0x17   :  { %1102 = vmatprep.subr.bf16.mxu0 %v1653_v34  ;;  %v638_v48 = vpack.c.bf16 %v1810_v5, %v636_v43  ;;  %v978_v49 = vpack.c.bf16 %v1810_v5, %v971_v44  ;;  %1757 = vmatprep.subr.bf16.mxu1 %v1810_v5  ;;  %v823_v56 = vunpack.c.l.bf16 %v1638_v39  ;;  %v1728_v57 = vunpack.c.h.bf16 %v1638_v39 }
  0x18   :  { %1103 = vmatpush1.bf16.msra.mxu0 %v1652_v35  ;;  %v1181_v53 = vld [vmem:[#allocation7 + $0x54] sm:$0xff]  ;;  %1715 = vst [vmem:[#allocation7 + $0x68] sm:$0xff] %v1714_v42   ;;  %vm1086_vm3 = vcmask 261120   ;;  %782 = vst [vmem:[#allocation7 + $0x8c] sm:$0xf] %v779_v47  ;;  %v999_v59 = vsel %vm205_vm2, %v993_v50, %v1841_v1  ;;  %v880_v60 = vunpack.c.l.bf16 %v1647_v32  ;;  %1576 = vperm.xlu0 %1790, %v1568_v45   ;;  %v948_v2 = vsel %vm68_vm1, %v937_v54, %v1841_v1 }
  0x19   :  { %1104 = vmatprep.subr.bf16.mxu0 %v1793_v41  ;;  %v1661_v58 = vcombine.high %v1878_v20, %v1181_v53  ;;  %641 = vst [vmem:[#allocation7 + $0x74] sm:$0xf] %v638_v48  ;;  %981 = vst [vmem:[#allocation7 + $0xb4] sm:$0xf] %v978_v49  ;;  %v1177_v63 = vld [vmem:[#allocation7 + $0x3c] sm:$0xff]  ;;  %v1006_v0 = vpack.c.bf16 %v1810_v5, %v999_v59  ;;  %v1027_v4 = vsel %vm205_vm2, %v1021_v55, %v1841_v1 }
  0x1a   :  { %v834_v6 = vsel %vm68_vm1, %v823_v56, %v1841_v1  ;;  %1758 = vmatpush3.bf16.msra.mxu1 %v1796_v46  ;;  %v1660_v7 = vcombine.low %v1878_v20, %v1181_v53  ;;  %v1799_v8 = vld [vmem:[#allocation7 + $0x50] ss:$12 sps:$4 sm:$0xff]   ;;  %v950_v9 = vpack.c.bf16 %v1810_v5, %v948_v2  ;;  %v1032_v10 = vsel %vm68_vm1, %v1027_v4, %v1841_v1  ;;  %v1801_v17 = vld [vmem:[#allocation7 + $0x38] ss:$12 sps:$4 sm:$0xff]  }
  0x1b   :  { %1763 = vmatprep.subr.bf16.mxu1 %v1810_v5  ;;  %1009 = vst [vmem:[#allocation7 + $0xb8] sm:$0xf] %v1006_v0  ;;  %v1034_v19 = vpack.c.bf16 %v1810_v5, %v1032_v10  ;;  %v1729_v11 = vpack.c.bf16 %v1728_v57, %v834_v6  ;;  %v891_v14 = vsel %vm68_vm1, %v880_v60, %v1841_v1 }
  0x1c   :  { %1105 = vmatpush1.bf16.msra.mxu0 %v1795_v52  ;;  %v1658_v20 = vcombine.high %v1903_v33, %v1177_v63  ;;  %953 = vst [vmem:[#allocation7 + $0xb0] sm:$0xf] %v950_v9  ;;  %v893_v15 = vpack.c.bf16 %v1810_v5, %v891_v14  ;;  %v1312_v16 = vld [vmem:[#allocation7 + $0x84] sm:$0xff]  ;;  %v1657_v1 = vcombine.low %v1903_v33, %v1177_v63 }
  0x1d   :  { %1227 = vmatprep.subr.bf16.mxu0 %v1661_v58  ;;  %1760 = vmatmul.mubr.msk.bf16.vlgmr.msra.gmra.mxu1 %vm1086_vm3, %v2052_v62  ;;  %1037 = vst [vmem:[#allocation7 + $0xbc] sm:$0xf] %v1034_v19  ;;  %1730 = vst [vmem:[#allocation7 + $0x98] sm:$0xff] %v1729_v11   ;;  %v1669_v18 = vcombine.high %v1920_v40, %v1312_v16  ;;  %v1668_v23 = vcombine.low %v1920_v40, %v1312_v16 }
  0x1e   :  { %1764 = vmatpush3.bf16.msra.mxu1 %v1799_v8  ;;  %896 = vst [vmem:[#allocation7 + $0xa4] sm:$0xf] %v893_v15  ;;  %1767 = vmatprep.mubr.msk.bf16.mxu1 %vm1812_vm0, %v1810_v5 }
  0x1f   :  { %1655 = vmatmul.mubr.msk.bf16.vlgmr.msra.gmra.mxu0 %vm1086_vm3, %v2052_v62  ;;  %1765 = vmatprep.subr.bf16.mxu1 %v1810_v5  ;;  %v1308_v21 = vld [vmem:[#allocation7 + $0x6c] sm:$0xff] }
  0x20   :  { %1228 = vmatpush1.bf16.msra.mxu0 %v1660_v7  ;;  %1247 = vmatprep.mubr.bf16.mxu0 %v1811_v12  ;;  %v1803_v22 = vld [vmem:[#allocation7 + $0x80] ss:$12 sps:$4 sm:$0xff]   ;;  %v1666_v33 = vcombine.high %v1948_v51, %v1308_v21  ;;  %v1805_v25 = vld [vmem:[#allocation7 + $0x68] ss:$12 sps:$4 sm:$0xff]   ;;  %v1665_v26 = vcombine.low %v1948_v51, %v1308_v21 }
  0x21   :  { %1229 = vmatprep.subr.bf16.mxu0 %v1658_v20 }
  0x22   :  { %1766 = vmatpush3.bf16.msra.mxu1 %v1801_v17  ;;  %v1443_v24 = vld [vmem:[#allocation7 + $0xb4] sm:$0xff] }
  0x23   :  { %1771 = vmatprep.subr.bf16.mxu1 %v1810_v5  ;;  %v1677_v40 = vcombine.high %v1961_v61, %v1443_v24  ;;  %v1676_v29 = vcombine.low %v1961_v61, %v1443_v24 }
  0x24   :  { %1230 = vmatpush1.bf16.msra.mxu0 %v1657_v1  ;;  %v1439_v27 = vld [vmem:[#allocation7 + $0x9c] sm:$0xff] }
  0x25   :  { %1358 = vmatprep.subr.bf16.mxu0 %v1669_v18  ;;  %1768 = vmatmul.mubr.msk.bf16.vlgmr.msra.gmra.mxu1 %vm1086_vm3, %v2052_v62  ;;  %v1807_v28 = vld [vmem:[#allocation7 + $0xb0] ss:$12 sps:$4 sm:$0xff]   ;;  %v1674_v51 = vcombine.high %v1993_v13, %v1439_v27  ;;  %v1809_v30 = vld [vmem:[#allocation7 + $0x98] ss:$12 sps:$4 sm:$0xff]   ;;  %v1673_v31 = vcombine.low %v1993_v13, %v1439_v27 }
  0x26   :  { %1772 = vmatpush3.bf16.msra.mxu1 %v1803_v22  ;;  %1775 = vmatprep.mubr.msk.bf16.mxu1 %vm1812_vm0, %v1810_v5 }
  0x27   :  { %1663 = vmatmul.mubr.msk.bf16.vlgmr.msra.gmra.mxu0 %vm1086_vm3, %v2052_v62  ;;  %1773 = vmatprep.subr.bf16.mxu1 %v1810_v5 }
  0x28   :  { %1359 = vmatpush1.bf16.msra.mxu0 %v1668_v23  ;;  %1378 = vmatprep.mubr.bf16.mxu0 %v1811_v12 }
  0x29   :  { %1360 = vmatprep.subr.bf16.mxu0 %v1666_v33 }
  0x2a   :  { %1774 = vmatpush3.bf16.msra.mxu1 %v1805_v25 }
  0x2b   :  { %1779 = vmatprep.subr.bf16.mxu1 %v1810_v5 }
  0x2c   :  { %1361 = vmatpush1.bf16.msra.mxu0 %v1665_v26 }
  0x2d   :  { %1489 = vmatprep.subr.bf16.mxu0 %v1677_v40  ;;  %1776 = vmatmul.mubr.msk.bf16.vlgmr.msra.gmra.mxu1 %vm1086_vm3, %v2052_v62 }
  0x2e   :  { %1780 = vmatpush3.bf16.msra.mxu1 %v1807_v28  ;;  %1783 = vmatprep.mubr.msk.bf16.mxu1 %vm1812_vm0, %v1810_v5 }
  0x2f   :  { %1671 = vmatmul.mubr.msk.bf16.vlgmr.msra.gmra.mxu0 %vm1086_vm3, %v2052_v62  ;;  %1781 = vmatprep.subr.bf16.mxu1 %v1810_v5 }
  0x30   :  { %1490 = vmatpush1.bf16.msra.mxu0 %v1676_v29  ;;  %1509 = vmatprep.mubr.bf16.mxu0 %v1811_v12 }
  0x31   :  { %1491 = vmatprep.subr.bf16.mxu0 %v1674_v51 }
  0x32   :  { %1782 = vmatpush3.bf16.msra.mxu1 %v1809_v30 }
  0x34   :  { %1492 = vmatpush1.bf16.msra.mxu0 %v1673_v31 }
  0x35   :  { %1784 = vmatmul.mubr.msk.bf16.vlgmr.msra.gmra.mxu1 %vm1086_vm3, %v2052_v62 }
  0x37   :  { %1679 = vmatmul.mubr.msk.bf16.vlgmr.msra.gmra.mxu0 %vm1086_vm3, %v2052_v62 }
  0x8d   :  { %v1572_v55 = vpop.permute.xlu0 %1571 }
  0x93   :  { %v1577_v16 = vpop.permute.xlu0 %1576 }
  0xdd   :  { %v1167_v61 = vpop.f32.mrf.mxu1 }
  0xdf   :  { %v1124_v32 = vpop.f32.mrf.mxu0  ;;  %v1761_v34 = vpop.f32.mrf.mxu1 }
  0xe1   :  { %v1126_v13 = vpop.f32.mrf.mxu0  ;;  %v1170_v35 = vpop.f32.mrf.mxu1 }
  0xe3   :  { %v1128_v36 = vpop.f32.mrf.mxu0  ;;  %v1762_v37 = vpop.f32.mrf.mxu1 }
  0xe5   :  { %v1130_v38 = vpop.f32.mrf.mxu0  ;;  %v1292_v12 = vpop.f32.mrf.mxu1 }
  0xe6   :  { %v1301_v50 = vmax.f32 %v1167_v61, %v1292_v12 }
  0xe7   :  { %v1249_v39 = vpop.f32.mrf.mxu0  ;;  %v1769_v41 = vpop.f32.mrf.mxu1 }
  0xe8   :  { %v1299_v53 = vmax.f32 %v1124_v32, %v1249_v39 }
  0xe9   :  { %v1251_v5 = vpop.f32.mrf.mxu0  ;;  %v1295_v3 = vpop.f32.mrf.mxu1 }
  0xea   :  { %v1300_v58 = vmax.f32 %v1126_v13, %v1251_v5  ;;  %v1304_v62 = vmax.f32 %v1170_v35, %v1295_v3 }
  0xeb   :  { %v1253_v42 = vpop.f32.mrf.mxu0  ;;  %v1770_v43 = vpop.f32.mrf.mxu1 }
  0xec   :  { %v1302_v2 = vmax.f32 %v1128_v36, %v1253_v42 }
  0xed   :  { %v1255_v44 = vpop.f32.mrf.mxu0  ;;  %v1423_v45 = vpop.f32.mrf.mxu1 }
  0xee   :  { %v1432_v56 = vmax.f32 %v1301_v50, %v1423_v45  ;;  %v1303_v19 = vmax.f32 %v1130_v38, %v1255_v44 }
  0xef   :  { %v1380_v46 = vpop.f32.mrf.mxu0  ;;  %v1777_v47 = vpop.f32.mrf.mxu1 }
  0xf0   :  { %v1430_v59 = vmax.f32 %v1299_v53, %v1380_v46 }
  0xf1   :  { %v1382_v48 = vpop.f32.mrf.mxu0  ;;  %v1426_v49 = vpop.f32.mrf.mxu1 }
  0xf2   :  { %v1431_v4 = vmax.f32 %v1300_v58, %v1382_v48  ;;  %v1435_v8 = vmax.f32 %v1304_v62, %v1426_v49 }
  0xf3   :  { %v1384_v52 = vpop.f32.mrf.mxu0  ;;  %v1778_v54 = vpop.f32.mrf.mxu1 }
  0xf4   :  { %v1433_v11 = vmax.f32 %v1302_v2, %v1384_v52 }
  0xf5   :  { %v1386_v57 = vpop.f32.mrf.mxu0  ;;  %v1554_v60 = vpop.f32.mrf.mxu1 }
  0xf6   :  { %v1563_v0 = vmax.f32 %v1432_v56, %v1554_v60  ;;  %v1434_v21 = vmax.f32 %v1303_v19, %v1386_v57 }
  0xf7   :  { %v1511_v63 = vpop.f32.mrf.mxu0  ;;  %v1785_v7 = vpop.f32.mrf.mxu1 }
  0xf8   :  { %v1561_v6 = vmax.f32 %v1430_v59, %v1511_v63  ;;  %v1581_v9 = vadd.f32 %v1572_v55, %v1563_v0 }
  0xf9   :  { %v1513_v10 = vpop.f32.mrf.mxu0  ;;  %v1557_v15 = vpop.f32.mrf.mxu1 }
  0xfa   :  { %v1579_v14 = vadd.f32 %v1572_v55, %v1561_v6  ;;  %v1562_v20 = vmax.f32 %v1431_v4, %v1513_v10  ;;  %v1587_v17 = vmax.f32 %v1581_v9, 0.0  ;;  %v1566_v18 = vmax.f32 %v1435_v8, %v1557_v15 }
  0xfb   :  { %v1515_v1 = vpop.f32.mrf.mxu0  ;;  %v1786_v24 = vpop.f32.mrf.mxu1 }
  0xfc   :  { %v1585_v22 = vmax.f32 %v1579_v14, 0.0  ;;  %v1580_v23 = vadd.f32 %v1572_v55, %v1562_v20  ;;  %v1564_v33 = vmax.f32 %v1433_v11, %v1515_v1  ;;  %1593 = vst [vmem:[%s2137_s4 + $0x10] sm:$0xff] %v1587_v17  ;;  %v1584_v25 = vadd.f32 %v1577_v16, %v1566_v18 }
  0xfd   :  { %v1517_v26 = vpop.f32.mrf.mxu0 }
  0xfe   :  { %1591 = vst [vmem:[%s2137_s4] sm:$0xff] %v1585_v22  ;;  %v1586_v40 = vmax.f32 %v1580_v23, 0.0  ;;  %v1582_v27 = vadd.f32 %v1577_v16, %v1564_v33  ;;  %v1565_v28 = vmax.f32 %v1434_v21, %v1517_v26  ;;  %v1590_v29 = vmax.f32 %v1584_v25, 0.0 }
 0x100   :  { %1592 = vst [vmem:[%s2137_s4 + $0x8] sm:$0xff] %v1586_v40  ;;  %v1588_v51 = vmax.f32 %v1582_v27, 0.0  ;;  %v1583_v30 = vadd.f32 %v1577_v16, %v1565_v28  ;;  %1596 = vst [vmem:[%s2137_s4 + $0x28] sm:$0xff] %v1590_v29 }
 0x102   :  { %1594 = vst [vmem:[%s2137_s4 + $0x18] sm:$0xff] %v1588_v51  ;;  %v1589_v31 = vmax.f32 %v1583_v30, 0.0 }
 0x104   :  { %1595 = vst [vmem:[%s2137_s4 + $0x20] sm:$0xff] %v1589_v31 }

// kernel: model_cnn_forward.4
= control target key start
LH: loop header
LB: loop body
LE: loop exit
PB: predicated region body
PF: predicated region fallthrough
CT: control target
= control target key end

     0   :  { %v1808_v0 = vmov 0   ;;  %vm261_vm0 = vcmask 130048   ;;  %s2277_s0 = inlined_call_operand.vmem [shape: bf16[4,400,32], index: 0, kind: input, shape index: {}]   ;;  %s2278_s1 = inlined_call_operand.vmem [shape: bf16[32,400], index: 1, kind: input, shape index: {}]   ;;  %s2279_s2 = inlined_call_operand.vmem [shape: f32[32,1], index: 2, kind: input, shape index: {}]   ;;  %s2280_s3 = inlined_call_operand.vmem [shape: f32[32,32], index: 3, kind: output, shape index: {}]  }
   0x1   :  { %317 = vmatprep.subr.bf16.mxu1 %v1808_v0  ;;  %v1696_v1 = vld [vmem:[%s2277_s0 + $0x78] sm:$0xff]   ;;  %1694 = vset.pattern.permute.xlu0 %v1808_v0  ;;  %v1699_v4 = vld [vmem:[%s2277_s0 + $0x70] sm:$0xff]   ;;  %v1702_v7 = vld [vmem:[%s2277_s0 + $0x68] sm:$0xff]  }
   0x2   :  { %v1697_v2 = vld [vmem:[%s2277_s0 + $0xb8] sm:$0xff]   ;;  %1695 = vset.pattern.permute.xlu1 %v1808_v0  ;;  %1581 = vmatprep.subr.bf16.mxu0 %v1696_v1  ;;  %v1700_v5 = vld [vmem:[%s2277_s0 + $0xb0] sm:$0xff]   ;;  %v1703_v8 = vld [vmem:[%s2277_s0 + $0xa8] sm:$0xff]  }
   0x3   :  { %v1698_v3 = vld [vmem:[%s2277_s0 + $0x38] sm:$0xff]   ;;  %318 = vmatpush1.bf16.msra.mxu1 %v1697_v2  ;;  %v1701_v6 = vld [vmem:[%s2277_s0 + $0x30] sm:$0xff]   ;;  %v1704_v9 = vld [vmem:[%s2277_s0 + $0x28] sm:$0xff]  }
   0x4   :  { %1582 = vmatpush3.bf16.msra.mxu0 %v1698_v3  ;;  %319 = vmatprep.subr.bf16.mxu1 %v1808_v0  ;;  %v1705_v10 = vld [vmem:[%s2277_s0 + $0x60] sm:$0xff]   ;;  %v1708_v13 = vld [vmem:[%s2277_s0 + $0x58] sm:$0xff]   ;;  %v1711_v16 = vld [vmem:[%s2277_s0 + $0x50] sm:$0xff]  }
   0x5   :  { %1583 = vmatprep.subr.bf16.mxu0 %v1699_v4  ;;  %v1706_v11 = vld [vmem:[%s2277_s0 + $0xa0] sm:$0xff]   ;;  %v1709_v14 = vld [vmem:[%s2277_s0 + $0x98] sm:$0xff]   ;;  %v1712_v17 = vld [vmem:[%s2277_s0 + $0x90] sm:$0xff]  }
   0x6   :  { %v1707_v12 = vld [vmem:[%s2277_s0 + $0x20] sm:$0xff]   ;;  %v1710_v15 = vld [vmem:[%s2277_s0 + $0x18] sm:$0xff]   ;;  %v1713_v18 = vld [vmem:[%s2277_s0 + $0x10] sm:$0xff]  }
   0x7   :  { %320 = vmatpush1.bf16.msra.mxu1 %v1700_v5  ;;  %v1714_v19 = vld [vmem:[%s2277_s0 + $0x48] sm:$0xff]   ;;  %v1904_v22 = vld [vmem:[%s2278_s1 + $0x4] ss:$16 sps:$4 sm:$0xff]   ;;  %v1930_v28 = vld [vmem:[%s2278_s1] ss:$16 sps:$4 sm:$0xff]  }
   0x8   :  { %1584 = vmatpush3.bf16.msra.mxu0 %v1701_v6  ;;  %321 = vmatprep.subr.bf16.mxu1 %v1808_v0  ;;  %v1715_v20 = vld [vmem:[%s2277_s0 + $0x88] sm:$0xff]   ;;  %v1717_v23 = vld [vmem:[%s2277_s0 + $0x40] sm:$0xff]   ;;  %v1730_v31 = vld [vmem:[%s2277_s0 + $0x138] sm:$0xff]  }
   0x9   :  { %1585 = vmatprep.subr.bf16.mxu0 %v1702_v7  ;;  %v1716_v21 = vld [vmem:[%s2277_s0 + $0x8] sm:$0xff]   ;;  %300 = vmatprep.mubr.bf16.mxu0 %v1904_v22  ;;  %v1718_v24 = vld [vmem:[%s2277_s0 + $0x80] sm:$0xff]   ;;  %v1731_v34 = vld [vmem:[%s2277_s0 + $0xf8] sm:$0xff]  }
   0xa   :  { %v1916_v25 = vld [vmem:[%s2278_s1 + $0xc] ss:$16 sps:$4 sm:$0xff]   ;;  %v1719_v26 = vld [vmem:[%s2277_s0] sm:$0xff]   ;;  %v1945_v32 = vld [vmem:[%s2278_s1 + $0x8] ss:$16 sps:$4 sm:$0xff]  }
   0xb   :  { %322 = vmatpush1.bf16.msra.mxu1 %v1703_v8  ;;  %1348 = vmatprep.mubr.msk.bf16.mxu1 %vm261_vm0, %v1916_v25  ;;  %v1727_v27 = vld [vmem:[%s2277_s0 + $0x140] sm:$0xff]   ;;  %v1733_v35 = vld [vmem:[%s2277_s0 + $0x130] sm:$0xff]   ;;  %v1732_v36 = vld [vmem:[%s2277_s0 + $0x178] sm:$0xff]  }
   0xc   :  { %1586 = vmatpush3.bf16.msra.mxu0 %v1704_v9  ;;  %323 = vmatprep.subr.bf16.mxu1 %v1808_v0  ;;  %v1723_v29 = vld [vmem:[%s2277_s0 + $0xc0] sm:$0xff]   ;;  %v1734_v37 = vld [vmem:[%s2277_s0 + $0xf0] sm:$0xff]   ;;  %v1736_v38 = vld [vmem:[%s2277_s0 + $0x128] sm:$0xff]  }
   0xd   :  { %1587 = vmatprep.subr.bf16.mxu0 %v1705_v10  ;;  %v1728_v30 = vld [vmem:[%s2277_s0 + $0x100] sm:$0xff]   ;;  %v1735_v39 = vld [vmem:[%s2277_s0 + $0x170] sm:$0xff]   ;;  %v1737_v41 = vld [vmem:[%s2277_s0 + $0xe8] sm:$0xff]  }
   0xe   :  { %v1729_v33 = vld [vmem:[%s2277_s0 + $0x180] sm:$0xff]   ;;  %v1738_v43 = vld [vmem:[%s2277_s0 + $0x168] sm:$0xff]   ;;  %v1744_v48 = vld [vmem:[%s2277_s0 + $0x118] sm:$0xff]  }
   0xf   :  { %324 = vmatpush1.bf16.msra.mxu1 %v1706_v11  ;;  %v1975_v40 = vld [vmem:[%s2278_s1 + $0x24] ss:$16 sps:$4 sm:$0xff]   ;;  %v1984_v42 = vld [vmem:[%s2278_s1 + $0x20] ss:$16 sps:$4 sm:$0xff]   ;;  %v2000_v46 = vld [vmem:[%s2278_s1 + $0x2c] ss:$16 sps:$4 sm:$0xff]  }
  0x10   :  { %1588 = vmatpush3.bf16.msra.mxu0 %v1707_v12  ;;  %325 = vmatprep.subr.bf16.mxu1 %v1808_v0  ;;  %v1739_v44 = vld [vmem:[%s2277_s0 + $0x120] sm:$0xff]   ;;  %v2007_v47 = vld [vmem:[%s2278_s1 + $0x28] ss:$16 sps:$4 sm:$0xff]   ;;  %v1751_v51 = vld [vmem:[%s2277_s0 + $0x110] sm:$0xff]  }
  0x11   :  { %1589 = vmatprep.subr.bf16.mxu0 %v1708_v13  ;;  %v1740_v45 = vld [vmem:[%s2277_s0 + $0xe0] sm:$0xff]   ;;  %v1746_v50 = vld [vmem:[%s2277_s0 + $0xd8] sm:$0xff]   ;;  %v1752_v53 = vld [vmem:[%s2277_s0 + $0xd0] sm:$0xff]  }
  0x12   :  { %v1741_v49 = vld [vmem:[%s2277_s0 + $0x160] sm:$0xff]   ;;  %v1747_v52 = vld [vmem:[%s2277_s0 + $0x158] sm:$0xff]   ;;  %v1754_v54 = vld [vmem:[%s2277_s0 + $0x108] sm:$0xff]  }
  0x13   :  { %326 = vmatpush1.bf16.msra.mxu1 %v1709_v14  ;;  %v1753_v55 = vld [vmem:[%s2277_s0 + $0x150] sm:$0xff]   ;;  %v1755_v56 = vld [vmem:[%s2277_s0 + $0xc8] sm:$0xff]   ;;  %v1761_v60 = vld [vmem:[%s2277_s0 + $0x200] sm:$0xff]  }
  0x14   :  { %1590 = vmatpush3.bf16.msra.mxu0 %v1710_v15  ;;  %327 = vmatprep.subr.bf16.mxu1 %v1808_v0  ;;  %v1758_v57 = vld [vmem:[%s2277_s0 + $0x208] sm:$0xff]   ;;  %v1762_v62 = vld [vmem:[%s2277_s0 + $0x1c0] sm:$0xff]   ;;  %v1764_v63 = vld [vmem:[%s2277_s0 + $0x1f8] sm:$0xff]  }
  0x15   :  { %1591 = vmatprep.subr.bf16.mxu0 %v1711_v16  ;;  %v1756_v58 = vld [vmem:[%s2277_s0 + $0x148] sm:$0xff]   ;;  %v1765_v2 = vld [vmem:[%s2277_s0 + $0x1b8] sm:$0xff]   ;;  %v1767_v3 = vld [vmem:[%s2277_s0 + $0x1f0] sm:$0xff]  }
  0x16   :  { %v1759_v59 = vld [vmem:[%s2277_s0 + $0x1c8] sm:$0xff]   ;;  %v1763_v4 = vld [vmem:[%s2277_s0 + $0x240] sm:$0xff]   ;;  %v1768_v5 = vld [vmem:[%s2277_s0 + $0x1b0] sm:$0xff]  }
  0x17   :  { %328 = vmatpush1.bf16.msra.mxu1 %v1712_v17  ;;  %v1757_v61 = vld [vmem:[%s2277_s0 + $0x188] sm:$0xff]   ;;  %v1766_v7 = vld [vmem:[%s2277_s0 + $0x238] sm:$0xff]   ;;  %v1773_v9 = vld [vmem:[%s2277_s0 + $0x1e0] sm:$0xff]  }
  0x18   :  { %1592 = vmatpush3.bf16.msra.mxu0 %v1713_v18  ;;  %329 = vmatprep.subr.bf16.mxu1 %v1808_v0  ;;  %v1760_v1 = vld [vmem:[%s2277_s0 + $0x248] sm:$0xff]   ;;  %v1769_v10 = vld [vmem:[%s2277_s0 + $0x230] sm:$0xff]   ;;  %v1774_v11 = vld [vmem:[%s2277_s0 + $0x1a0] sm:$0xff]  }
  0x19   :  { %1593 = vmatprep.subr.bf16.mxu0 %v1714_v19  ;;  %v1770_v6 = vld [vmem:[%s2277_s0 + $0x1e8] sm:$0xff]   ;;  %v1776_v12 = vld [vmem:[%s2277_s0 + $0x1d8] sm:$0xff]   ;;  %v1779_v15 = vld [vmem:[%s2277_s0 + $0x1d0] sm:$0xff]  }
  0x1a   :  { %v1771_v8 = vld [vmem:[%s2277_s0 + $0x1a8] sm:$0xff]   ;;  %v1777_v14 = vld [vmem:[%s2277_s0 + $0x198] sm:$0xff]   ;;  %v1775_v16 = vld [vmem:[%s2277_s0 + $0x220] sm:$0xff]  }
  0x1b   :  { %330 = vmatpush1.bf16.msra.mxu1 %v1715_v20  ;;  %v1772_v13 = vld [vmem:[%s2277_s0 + $0x228] sm:$0xff]   ;;  %v1780_v17 = vld [vmem:[%s2277_s0 + $0x190] sm:$0xff]   ;;  %v1778_v19 = vld [vmem:[%s2277_s0 + $0x218] sm:$0xff]  }
  0x1c   :  { %1594 = vmatpush3.bf16.msra.mxu0 %v1716_v21  ;;  %331 = vmatprep.subr.bf16.mxu1 %v1808_v0  ;;  %v1782_v18 = vld [vmem:[%s2277_s0 + $0x2d0] sm:$0xff]   ;;  %v1785_v21 = vld [vmem:[%s2277_s0 + $0x2c8] sm:$0xff]  }
  0x1d   :  { %1595 = vmatprep.subr.bf16.mxu0 %v1717_v23  ;;  %v1783_v20 = vld [vmem:[%s2277_s0 + $0x290] sm:$0xff]  }
  0x1e   :  { %v1781_v23 = vld [vmem:[%s2277_s0 + $0x210] sm:$0xff]  }
  0x1f   :  { %332 = vmatpush1.bf16.msra.mxu1 %v1718_v24  ;;  %v1786_v24 = vld [vmem:[%s2277_s0 + $0x288] sm:$0xff]  }
  0x20   :  { %1596 = vmatpush3.bf16.msra.mxu0 %v1719_v26  ;;  %347 = vmatprep.subr.bf16.mxu1 %v1808_v0  ;;  %v1788_v26 = vld [vmem:[%s2277_s0 + $0x2c0] sm:$0xff]  }
  0x21   :  { %1609 = vmatprep.subr.bf16.mxu0 %v1727_v27  ;;  %v1784_v27 = vld [vmem:[%s2277_s0 + $0x250] sm:$0xff]  }
  0x23   :  { %301 = vmatmul.mubr.bf16.vlgmr.msra.gmra.mxu0 %v1930_v28  ;;  %348 = vmatpush2.bf16.msra.mxu1 %v1723_v29  ;;  %v1789_v29 = vld [vmem:[%s2277_s0 + $0x280] sm:$0xff]  }
  0x24   :  { %616 = vmatprep.subr.bf16.mxu1 %v1808_v0  ;;  %1610 = vmatpush3.bf16.msra.mxu0 %v1728_v30  ;;  %v1275_v30 = vld [vmem:[%s2279_s2] sm:$0xff] }
  0x25   :  { %1611 = vmatprep.subr.bf16.mxu0 %v1730_v31  ;;  %308 = vmatprep.mubr.bf16.mxu0 %v1975_v40  ;;  %v1277_v31 = vld [vmem:[%s2279_s2 + $0x10] sm:$0xff] }
  0x26   :  { %350 = vmatmul.mubr.bf16.vlgmr.msra.gmra.mxu1 %v1945_v32  ;;  %1281 = vperm.xlu0 %1694, %v1275_v30  }
  0x27   :  { %617 = vmatpush1.bf16.msra.mxu1 %v1729_v33  ;;  %1349 = vmatprep.mubr.msk.bf16.mxu1 %vm261_vm0, %v2000_v46  ;;  %v1791_v33 = vld [vmem:[%s2277_s0 + $0x2b8] sm:$0xff]  }
  0x28   :  { %618 = vmatprep.subr.bf16.mxu1 %v1808_v0  ;;  %1612 = vmatpush3.bf16.msra.mxu0 %v1731_v34  ;;  %v1787_v34 = vld [vmem:[%s2277_s0 + $0x310] sm:$0xff]  }
  0x29   :  { %1613 = vmatprep.subr.bf16.mxu0 %v1733_v35  ;;  %1291 = vperm.xlu1 %1695, %v1277_v31   ;;  %v1792_v35 = vld [vmem:[%s2277_s0 + $0x278] sm:$0xff]  }
  0x2b   :  { %619 = vmatpush1.bf16.msra.mxu1 %v1732_v36  ;;  %309 = vmatmul.mubr.bf16.gmra.mxu0 %v1984_v42  ;;  %v1276_v36 = vld [vmem:[%s2279_s2 + $0x8] sm:$0xff] }
  0x2c   :  { %620 = vmatprep.subr.bf16.mxu1 %v1808_v0  ;;  %1614 = vmatpush3.bf16.msra.mxu0 %v1734_v37  ;;  %v1794_v37 = vld [vmem:[%s2277_s0 + $0x2b0] sm:$0xff]  }
  0x2d   :  { %1615 = vmatprep.subr.bf16.mxu0 %v1736_v38  ;;  %599 = vmatprep.mubr.bf16.mxu0 %v1904_v22  ;;  %v1278_v38 = vld [vmem:[%s2279_s2 + $0x18] sm:$0xff] }
  0x2e   :  { %358 = vmatmul.mubr.bf16.gmra.mxu1 %v2007_v47  ;;  %1286 = vperm.xlu0 %1694, %v1276_v36  }
  0x2f   :  { %621 = vmatpush1.bf16.msra.mxu1 %v1735_v39  ;;  %1425 = vmatprep.mubr.msk.bf16.mxu1 %vm261_vm0, %v1916_v25  ;;  %v1795_v39 = vld [vmem:[%s2277_s0 + $0x270] sm:$0xff]  }
  0x30   :  { %622 = vmatprep.subr.bf16.mxu1 %v1808_v0  ;;  %1616 = vmatpush3.bf16.msra.mxu0 %v1737_v41  ;;  %v1797_v41 = vld [vmem:[%s2277_s0 + $0x2a8] sm:$0xff]  }
  0x31   :  { %1617 = vmatprep.subr.bf16.mxu0 %v1739_v44  ;;  %1296 = vperm.xlu1 %1695, %v1278_v38   ;;  %v1798_v44 = vld [vmem:[%s2277_s0 + $0x268] sm:$0xff]  }
  0x33   :  { %623 = vmatpush1.bf16.msra.mxu1 %v1738_v43  ;;  %v1793_v43 = vld [vmem:[%s2277_s0 + $0x300] sm:$0xff]  }
  0x34   :  { %624 = vmatprep.subr.bf16.mxu1 %v1808_v0  ;;  %1618 = vmatpush3.bf16.msra.mxu0 %v1740_v45  ;;  %v1800_v45 = vld [vmem:[%s2277_s0 + $0x2a0] sm:$0xff]  }
  0x35   :  { %1619 = vmatprep.subr.bf16.mxu0 %v1744_v48  ;;  %v1796_v48 = vld [vmem:[%s2277_s0 + $0x2f8] sm:$0xff]  }
  0x37   :  { %625 = vmatpush1.bf16.msra.mxu1 %v1741_v49  ;;  %v1801_v49 = vld [vmem:[%s2277_s0 + $0x260] sm:$0xff]  }
  0x38   :  { %626 = vmatprep.subr.bf16.mxu1 %v1808_v0  ;;  %1620 = vmatpush3.bf16.msra.mxu0 %v1746_v50  ;;  %v1803_v50 = vld [vmem:[%s2277_s0 + $0x298] sm:$0xff]  }
  0x39   :  { %1621 = vmatprep.subr.bf16.mxu0 %v1751_v51  ;;  %v1799_v51 = vld [vmem:[%s2277_s0 + $0x2f0] sm:$0xff]  }
  0x3b   :  { %627 = vmatpush1.bf16.msra.mxu1 %v1747_v52  ;;  %v1802_v52 = vld [vmem:[%s2277_s0 + $0x2e8] sm:$0xff]  }
  0x3c   :  { %628 = vmatprep.subr.bf16.mxu1 %v1808_v0  ;;  %1622 = vmatpush3.bf16.msra.mxu0 %v1752_v53  ;;  %v1805_v53 = vld [vmem:[%s2277_s0 + $0x2e0] sm:$0xff]  }
  0x3d   :  { %1623 = vmatprep.subr.bf16.mxu0 %v1754_v54  ;;  %v1806_v54 = vld [vmem:[%s2277_s0 + $0x2d8] sm:$0xff]  }
  0x3f   :  { %629 = vmatpush1.bf16.msra.mxu1 %v1753_v55  ;;  %v1807_v55 = vld [vmem:[%s2277_s0 + $0x318] sm:$0xff]  }
  0x40   :  { %630 = vmatprep.subr.bf16.mxu1 %v1808_v0  ;;  %1624 = vmatpush3.bf16.msra.mxu0 %v1755_v56 }
  0x41   :  { %1637 = vmatprep.subr.bf16.mxu0 %v1758_v57 }
  0x43   :  { %631 = vmatpush1.bf16.msra.mxu1 %v1756_v58  ;;  %600 = vmatmul.mubr.bf16.vlgmr.msra.gmra.mxu0 %v1930_v28 }
  0x44   :  { %646 = vmatprep.subr.bf16.mxu1 %v1808_v0  ;;  %1638 = vmatpush3.bf16.msra.mxu0 %v1759_v59 }
  0x45   :  { %1639 = vmatprep.subr.bf16.mxu0 %v1761_v60  ;;  %607 = vmatprep.mubr.bf16.mxu0 %v1975_v40 }
  0x47   :  { %647 = vmatpush2.bf16.msra.mxu1 %v1757_v61 }
  0x48   :  { %919 = vmatprep.subr.bf16.mxu1 %v1808_v0  ;;  %1640 = vmatpush3.bf16.msra.mxu0 %v1762_v62 }
  0x49   :  { %1641 = vmatprep.subr.bf16.mxu0 %v1764_v63 }
  0x4a   :  { %649 = vmatmul.mubr.bf16.vlgmr.msra.gmra.mxu1 %v1945_v32 }
  0x4b   :  { %920 = vmatpush1.bf16.msra.mxu1 %v1760_v1  ;;  %608 = vmatmul.mubr.bf16.gmra.mxu0 %v1984_v42 }
  0x4c   :  { %921 = vmatprep.subr.bf16.mxu1 %v1808_v0  ;;  %1426 = vmatprep.mubr.msk.bf16.mxu1 %vm261_vm0, %v2000_v46 }
  0x4d   :  { %1642 = vmatpush3.bf16.msra.mxu0 %v1765_v2  ;;  %902 = vmatprep.mubr.bf16.mxu0 %v1904_v22 }
  0x4e   :  { %1643 = vmatprep.subr.bf16.mxu0 %v1767_v3 }
  0x4f   :  { %922 = vmatpush1.bf16.msra.mxu1 %v1763_v4 }
  0x50   :  { %923 = vmatprep.subr.bf16.mxu1 %v1808_v0 }
  0x51   :  { %1644 = vmatpush3.bf16.msra.mxu0 %v1768_v5 }
  0x52   :  { %657 = vmatmul.mubr.bf16.gmra.mxu1 %v2007_v47  ;;  %1645 = vmatprep.subr.bf16.mxu0 %v1770_v6 }
  0x53   :  { %924 = vmatpush1.bf16.msra.mxu1 %v1766_v7  ;;  %1502 = vmatprep.mubr.msk.bf16.mxu1 %vm261_vm0, %v1916_v25 }
  0x54   :  { %925 = vmatprep.subr.bf16.mxu1 %v1808_v0 }
  0x55   :  { %1646 = vmatpush3.bf16.msra.mxu0 %v1771_v8 }
  0x56   :  { %1647 = vmatprep.subr.bf16.mxu0 %v1773_v9 }
  0x57   :  { %926 = vmatpush1.bf16.msra.mxu1 %v1769_v10 }
  0x58   :  { %927 = vmatprep.subr.bf16.mxu1 %v1808_v0 }
  0x59   :  { %1648 = vmatpush3.bf16.msra.mxu0 %v1774_v11 }
  0x5a   :  { %1649 = vmatprep.subr.bf16.mxu0 %v1776_v12 }
  0x5b   :  { %928 = vmatpush1.bf16.msra.mxu1 %v1772_v13 }
  0x5c   :  { %929 = vmatprep.subr.bf16.mxu1 %v1808_v0 }
  0x5d   :  { %1650 = vmatpush3.bf16.msra.mxu0 %v1777_v14 }
  0x5e   :  { %1651 = vmatprep.subr.bf16.mxu0 %v1779_v15 }
  0x5f   :  { %930 = vmatpush1.bf16.msra.mxu1 %v1775_v16 }
  0x60   :  { %931 = vmatprep.subr.bf16.mxu1 %v1808_v0 }
  0x61   :  { %1652 = vmatpush3.bf16.msra.mxu0 %v1780_v17 }
  0x62   :  { %1665 = vmatprep.subr.bf16.mxu0 %v1782_v18 }
  0x63   :  { %932 = vmatpush1.bf16.msra.mxu1 %v1778_v19 }
  0x64   :  { %933 = vmatprep.subr.bf16.mxu1 %v1808_v0  ;;  %903 = vmatmul.mubr.bf16.vlgmr.msra.gmra.mxu0 %v1930_v28 }
  0x65   :  { %1666 = vmatpush3.bf16.msra.mxu0 %v1783_v20  ;;  %910 = vmatprep.mubr.bf16.mxu0 %v1975_v40 }
  0x66   :  { %1667 = vmatprep.subr.bf16.mxu0 %v1785_v21 }
  0x67   :  { %934 = vmatpush1.bf16.msra.mxu1 %v1781_v23 }
  0x68   :  { %949 = vmatprep.subr.bf16.mxu1 %v1808_v0 }
  0x69   :  { %1668 = vmatpush3.bf16.msra.mxu0 %v1786_v24 }
  0x6a   :  { %1669 = vmatprep.subr.bf16.mxu0 %v1788_v26 }
  0x6b   :  { %950 = vmatpush2.bf16.msra.mxu1 %v1784_v27 }
  0x6c   :  { %1222 = vmatprep.subr.bf16.mxu1 %v1808_v0  ;;  %911 = vmatmul.mubr.bf16.gmra.mxu0 %v1984_v42 }
  0x6d   :  { %1670 = vmatpush3.bf16.msra.mxu0 %v1789_v29  ;;  %1205 = vmatprep.mubr.bf16.mxu0 %v1904_v22  ;;  %v1790_v22 = vld [vmem:[%s2277_s0 + $0x308] sm:$0xff]  }
  0x6e   :  { %952 = vmatmul.mubr.bf16.vlgmr.msra.gmra.mxu1 %v1945_v32  ;;  %1671 = vmatprep.subr.bf16.mxu0 %v1791_v33 }
  0x6f   :  { %1223 = vmatpush1.bf16.msra.mxu1 %v1787_v34  ;;  %1503 = vmatprep.mubr.msk.bf16.mxu1 %vm261_vm0, %v2000_v46 }
  0x70   :  { %1224 = vmatprep.subr.bf16.mxu1 %v1808_v0 }
  0x71   :  { %1672 = vmatpush3.bf16.msra.mxu0 %v1792_v35 }
  0x72   :  { %1673 = vmatprep.subr.bf16.mxu0 %v1794_v37 }
  0x73   :  { %1225 = vmatpush1.bf16.msra.mxu1 %v1790_v22 }
  0x74   :  { %1226 = vmatprep.subr.bf16.mxu1 %v1808_v0 }
  0x75   :  { %1674 = vmatpush3.bf16.msra.mxu0 %v1795_v39 }
  0x76   :  { %960 = vmatmul.mubr.bf16.gmra.mxu1 %v2007_v47  ;;  %1675 = vmatprep.subr.bf16.mxu0 %v1797_v41 }
  0x77   :  { %1227 = vmatpush1.bf16.msra.mxu1 %v1793_v43  ;;  %1579 = vmatprep.mubr.msk.bf16.mxu1 %vm261_vm0, %v1916_v25  ;;  %v1804_v25 = vld [vmem:[%s2277_s0 + $0x258] sm:$0xff]  }
  0x78   :  { %1228 = vmatprep.subr.bf16.mxu1 %v1808_v0 }
  0x79   :  { %1676 = vmatpush3.bf16.msra.mxu0 %v1798_v44 }
  0x7a   :  { %1677 = vmatprep.subr.bf16.mxu0 %v1800_v45 }
  0x7b   :  { %1229 = vmatpush1.bf16.msra.mxu1 %v1796_v48 }
  0x7c   :  { %1230 = vmatprep.subr.bf16.mxu1 %v1808_v0 }
  0x7d   :  { %1678 = vmatpush3.bf16.msra.mxu0 %v1801_v49 }
  0x7e   :  { %1679 = vmatprep.subr.bf16.mxu0 %v1803_v50 }
  0x7f   :  { %1231 = vmatpush1.bf16.msra.mxu1 %v1799_v51 }
  0x80   :  { %1232 = vmatprep.subr.bf16.mxu1 %v1808_v0 }
  0x81   :  { %1680 = vmatpush3.bf16.msra.mxu0 %v1804_v25 }
  0x83   :  { %1233 = vmatpush1.bf16.msra.mxu1 %v1802_v52 }
  0x84   :  { %1234 = vmatprep.subr.bf16.mxu1 %v1808_v0  ;;  %1206 = vmatmul.mubr.bf16.vlgmr.msra.gmra.mxu0 %v1930_v28 }
  0x85   :  { %1213 = vmatprep.mubr.bf16.mxu0 %v1975_v40 }
  0x87   :  { %1235 = vmatpush1.bf16.msra.mxu1 %v1805_v53 }
  0x88   :  { %1236 = vmatprep.subr.bf16.mxu1 %v1808_v0 }
  0x8b   :  { %1237 = vmatpush1.bf16.msra.mxu1 %v1806_v54 }
  0x8c   :  { %1252 = vmatprep.subr.bf16.mxu1 %v1808_v0  ;;  %1214 = vmatmul.mubr.bf16.gmra.mxu0 %v1984_v42 }
  0x8f   :  { %1253 = vmatpush2.bf16.msra.mxu1 %v1807_v55 }
  0x92   :  { %1255 = vmatmul.mubr.bf16.vlgmr.msra.gmra.mxu1 %v1945_v32 }
  0x93   :  { %1580 = vmatprep.mubr.msk.bf16.mxu1 %vm261_vm0, %v2000_v46 }
  0x9a   :  { %1263 = vmatmul.mubr.bf16.gmra.mxu1 %v2007_v47 }
  0xe3   :  { %v1597_v40 = vpop.f32.mrf.mxu0 }
  0xe5   :  { %v1598_v58 = vpop.f32.mrf.mxu0 }
  0xe6   :  { %v351_v28 = vpop.f32.mrf.mxu1  ;;  %v1599_v5 = vadd.f32 %v1598_v58, %v1597_v40 }
  0xe7   :  { %v1600_v60 = vpop.f32.mrf.mxu0 }
  0xe8   :  { %v353_v56 = vpop.f32.mrf.mxu1  ;;  %v352_v9 = vadd.f32 %v1599_v5, %v351_v28 }
  0xe9   :  { %v1601_v62 = vpop.f32.mrf.mxu0 }
  0xea   :  { %v354_v57 = vpop.f32.mrf.mxu1  ;;  %v1602_v10 = vadd.f32 %v1601_v62, %v1600_v60 }
  0xeb   :  { %v1603_v63 = vpop.f32.mrf.mxu0 }
  0xec   :  { %v356_v59 = vpop.f32.mrf.mxu1  ;;  %v355_v18 = vadd.f32 %v1602_v10, %v354_v57 }
  0xed   :  { %v1604_v2 = vpop.f32.mrf.mxu0 }
  0xee   :  { %v359_v61 = vpop.f32.mrf.mxu1  ;;  %v1605_v19 = vadd.f32 %v1604_v2, %v1603_v63  ;;  %v1282_v2 = vpop.permute.xlu0 %1281 }
  0xef   :  { %v1606_v32 = vpop.f32.mrf.mxu0 }
  0xf0   :  { %v361_v0 = vpop.f32.mrf.mxu1  ;;  %v360_v30 = vadd.f32 %v1605_v19, %v359_v61 }
  0xf1   :  { %v1607_v3 = vpop.f32.mrf.mxu0 }
  0xf2   :  { %v362_v42 = vpop.f32.mrf.mxu1  ;;  %v1608_v31 = vadd.f32 %v1607_v3, %v1606_v32 }
  0xf4   :  { %v364_v1 = vpop.f32.mrf.mxu1  ;;  %v2259_v38 = vadd.f32 %v1608_v31, %v362_v42  ;;  %v1292_v31 = vpop.permute.xlu1 %1291 }
 0x103   :  { %v1625_v4 = vpop.f32.mrf.mxu0 }
 0x105   :  { %v1626_v46 = vpop.f32.mrf.mxu0 }
 0x106   :  { %v1627_v47 = vadd.f32 %v1626_v46, %v1625_v4 }
 0x107   :  { %v1628_v6 = vpop.f32.mrf.mxu0 }
 0x109   :  { %v1629_v7 = vpop.f32.mrf.mxu0 }
 0x10a   :  { %v650_v8 = vpop.f32.mrf.mxu1  ;;  %v1630_v12 = vadd.f32 %v1629_v7, %v1628_v6 }
 0x10b   :  { %v651_v11 = vadd.f32 %v1627_v47, %v650_v8  ;;  %v1631_v13 = vpop.f32.mrf.mxu0 }
 0x10c   :  { %v652_v14 = vpop.f32.mrf.mxu1 }
 0x10d   :  { %v665_v15 = vmax.f32 %v352_v9, %v651_v11  ;;  %v1632_v16 = vpop.f32.mrf.mxu0 }
 0x10e   :  { %v653_v17 = vpop.f32.mrf.mxu1  ;;  %v1633_v21 = vadd.f32 %v1632_v16, %v1631_v13 }
 0x10f   :  { %v654_v20 = vadd.f32 %v1630_v12, %v653_v17  ;;  %v1634_v23 = vpop.f32.mrf.mxu0 }
 0x110   :  { %v655_v24 = vpop.f32.mrf.mxu1 }
 0x111   :  { %v666_v26 = vmax.f32 %v355_v18, %v654_v20  ;;  %v1635_v27 = vpop.f32.mrf.mxu0  ;;  %v1287_v18 = vpop.permute.xlu0 %1286 }
 0x112   :  { %v658_v29 = vpop.f32.mrf.mxu1  ;;  %v1636_v34 = vadd.f32 %v1635_v27, %v1634_v23 }
 0x113   :  { %v659_v33 = vadd.f32 %v1633_v21, %v658_v29 }
 0x114   :  { %v660_v35 = vpop.f32.mrf.mxu1 }
 0x115   :  { %v667_v36 = vmax.f32 %v360_v30, %v659_v33 }
 0x116   :  { %v661_v37 = vpop.f32.mrf.mxu1 }
 0x117   :  { %v2261_v22 = vadd.f32 %v1636_v34, %v661_v37 }
 0x118   :  { %v663_v39 = vpop.f32.mrf.mxu1 }
 0x119   :  { %v668_v41 = vmax.f32 %v2259_v38, %v2261_v22 }
 0x124   :  { %v1653_v43 = vpop.f32.mrf.mxu0 }
 0x126   :  { %v1654_v44 = vpop.f32.mrf.mxu0 }
 0x127   :  { %v1655_v62 = vadd.f32 %v1654_v44, %v1653_v43 }
 0x128   :  { %v1656_v45 = vpop.f32.mrf.mxu0 }
 0x12a   :  { %v1657_v50 = vpop.f32.mrf.mxu0 }
 0x12b   :  { %v1658_v42 = vadd.f32 %v1657_v50, %v1656_v45  ;;  %v1297_v45 = vpop.permute.xlu1 %1296 }
 0x12c   :  { %v1659_v52 = vpop.f32.mrf.mxu0 }
 0x12e   :  { %v953_v48 = vpop.f32.mrf.mxu1  ;;  %v1660_v55 = vpop.f32.mrf.mxu0 }
 0x12f   :  { %v954_v63 = vadd.f32 %v1655_v62, %v953_v48  ;;  %v1661_v5 = vadd.f32 %v1660_v55, %v1659_v52 }
 0x130   :  { %v955_v49 = vpop.f32.mrf.mxu1  ;;  %v1662_v56 = vpop.f32.mrf.mxu0 }
 0x131   :  { %v968_v4 = vmax.f32 %v665_v15, %v954_v63 }
 0x132   :  { %v956_v51 = vpop.f32.mrf.mxu1  ;;  %v1663_v57 = vpop.f32.mrf.mxu0 }
 0x133   :  { %v957_v46 = vadd.f32 %v1658_v42, %v956_v51  ;;  %v1664_v9 = vadd.f32 %v1663_v57, %v1662_v56 }
 0x134   :  { %v958_v25 = vpop.f32.mrf.mxu1 }
 0x135   :  { %v969_v12 = vmax.f32 %v666_v26, %v957_v46 }
 0x136   :  { %v961_v53 = vpop.f32.mrf.mxu1 }
 0x137   :  { %v962_v13 = vadd.f32 %v1661_v5, %v961_v53 }
 0x138   :  { %v963_v54 = vpop.f32.mrf.mxu1 }
 0x139   :  { %v970_v24 = vmax.f32 %v667_v36, %v962_v13 }
 0x13a   :  { %v964_v28 = vpop.f32.mrf.mxu1 }
 0x13b   :  { %v965_v27 = vadd.f32 %v1664_v9, %v964_v28 }
 0x13c   :  { %v966_v40 = vpop.f32.mrf.mxu1 }
 0x13d   :  { %v971_v38 = vmax.f32 %v668_v41, %v965_v27 }
 0x144   :  { %v1681_v58 = vpop.f32.mrf.mxu0 }
 0x146   :  { %v1682_v59 = vpop.f32.mrf.mxu0 }
 0x147   :  { %v1683_v1 = vadd.f32 %v1682_v59, %v1681_v58 }
 0x148   :  { %v1684_v60 = vpop.f32.mrf.mxu0 }
 0x14a   :  { %v1685_v61 = vpop.f32.mrf.mxu0 }
 0x14b   :  { %v1686_v7 = vadd.f32 %v1685_v61, %v1684_v60 }
 0x14c   :  { %v1687_v0 = vpop.f32.mrf.mxu0 }
 0x14e   :  { %v1688_v32 = vpop.f32.mrf.mxu0 }
 0x14f   :  { %v1689_v19 = vadd.f32 %v1688_v32, %v1687_v0 }
 0x150   :  { %v1690_v10 = vpop.f32.mrf.mxu0 }
 0x152   :  { %v1256_v3 = vpop.f32.mrf.mxu1  ;;  %v1691_v23 = vpop.f32.mrf.mxu0 }
 0x153   :  { %v1257_v47 = vadd.f32 %v1683_v1, %v1256_v3  ;;  %v1692_v33 = vadd.f32 %v1691_v23, %v1690_v10 }
 0x154   :  { %v1258_v6 = vpop.f32.mrf.mxu1 }
 0x155   :  { %v1271_v8 = vmax.f32 %v968_v4, %v1257_v47 }
 0x156   :  { %v1259_v11 = vpop.f32.mrf.mxu1 }
 0x157   :  { %v1299_v14 = vadd.f32 %v1282_v2, %v1271_v8  ;;  %v1260_v16 = vadd.f32 %v1686_v7, %v1259_v11 }
 0x158   :  { %v1261_v17 = vpop.f32.mrf.mxu1 }
 0x159   :  { %v1303_v20 = vmax.f32 %v1299_v14, 0.0  ;;  %v1272_v21 = vmax.f32 %v969_v12, %v1260_v16 }
 0x15a   :  { %v1264_v15 = vpop.f32.mrf.mxu1 }
 0x15b   :  { %1307 = vst [vmem:[%s2280_s3] sm:$0xff] %v1303_v20  ;;  %v1300_v29 = vadd.f32 %v1287_v18, %v1272_v21  ;;  %v1265_v30 = vadd.f32 %v1689_v19, %v1264_v15 }
 0x15c   :  { %v1266_v26 = vpop.f32.mrf.mxu1 }
 0x15d   :  { %v1304_v34 = vmax.f32 %v1300_v29, 0.0  ;;  %v1273_v35 = vmax.f32 %v970_v24, %v1265_v30 }
 0x15e   :  { %v1267_v37 = vpop.f32.mrf.mxu1 }
 0x15f   :  { %1308 = vst [vmem:[%s2280_s3 + $0x8] sm:$0xff] %v1304_v34  ;;  %v1301_v22 = vadd.f32 %v1292_v31, %v1273_v35  ;;  %v1268_v36 = vadd.f32 %v1692_v33, %v1267_v37 }
 0x160   :  { %v1269_v39 = vpop.f32.mrf.mxu1 }
 0x161   :  { %v1305_v43 = vmax.f32 %v1301_v22, 0.0  ;;  %v1274_v44 = vmax.f32 %v971_v38, %v1268_v36 }
 0x163   :  { %1309 = vst [vmem:[%s2280_s3 + $0x10] sm:$0xff] %v1305_v43  ;;  %v1302_v48 = vadd.f32 %v1297_v45, %v1274_v44 }
 0x165   :  { %v1306_v49 = vmax.f32 %v1302_v48, 0.0 }
 0x167   :  { %1310 = vst [vmem:[%s2280_s3 + $0x18] sm:$0xff] %v1306_v49 }

// kernel: model_cnn_forward.5
= control target key start
LH: loop header
LB: loop body
LE: loop exit
PB: predicated region body
PF: predicated region fallthrough
CT: control target
= control target key end

     0   :  { %s1042_s0 = inlined_call_operand.vmem [shape: f32[2,512], index: 0, kind: input, shape index: {}]   ;;  %s1043_s1 = inlined_call_operand.vmem [shape: f32[512,256], index: 1, kind: input, shape index: {}]   ;;  %s1044_s2 = inlined_call_operand.vmem [shape: f32[1,256], index: 2, kind: input, shape index: {}]   ;;  %s1045_s3 = inlined_call_operand.vmem [shape: f32[256,128], index: 3, kind: input, shape index: {}]   ;;  %s1046_s4 = inlined_call_operand.vmem [shape: f32[1,128], index: 4, kind: input, shape index: {}]   ;;  %s1047_s5 = inlined_call_operand.hbm [shape: f32[2,128], index: 5, kind: output, shape index: {}]  }
   0x1   :  { %v53_v0 = vld [vmem:[%s1043_s1 + $0xf8] sm:$0xff]  ;;  %v52_v2 = vld [vmem:[%s1043_s1 + $0xf0] sm:$0xff]  ;;  %v51_v4 = vld [vmem:[%s1043_s1 + $0xe8] sm:$0xff] }
   0x2   :  { %v117_v1 = vld [vmem:[%s1043_s1 + $0x2f8] sm:$0xff]  ;;  %184 = vmatprep.subr.mxu0 %v53_v0  ;;  %v116_v3 = vld [vmem:[%s1043_s1 + $0x2f0] sm:$0xff]  ;;  %v115_v5 = vld [vmem:[%s1043_s1 + $0x2e8] sm:$0xff] }
   0x3   :  { %255 = vmatprep.subr.mxu1 %v117_v1  ;;  %185 = vmatpush1.msra.mxu0 %v52_v2  ;;  %v50_v6 = vld [vmem:[%s1043_s1 + $0xe0] sm:$0xff]  ;;  %v49_v8 = vld [vmem:[%s1043_s1 + $0xd8] sm:$0xff]  ;;  %v48_v10 = vld [vmem:[%s1043_s1 + $0xd0] sm:$0xff] }
   0x4   :  { %256 = vmatpush1.msra.mxu1 %v116_v3  ;;  %v114_v7 = vld [vmem:[%s1043_s1 + $0x2e0] sm:$0xff]  ;;  %186 = vmatprep.subr.mxu0 %v51_v4  ;;  %v113_v9 = vld [vmem:[%s1043_s1 + $0x2d8] sm:$0xff]  ;;  %v112_v11 = vld [vmem:[%s1043_s1 + $0x2d0] sm:$0xff] }
   0x5   :  { %257 = vmatprep.subr.mxu1 %v115_v5  ;;  %187 = vmatpush1.msra.mxu0 %v50_v6  ;;  %v47_v12 = vld [vmem:[%s1043_s1 + $0xc8] sm:$0xff]  ;;  %v46_v14 = vld [vmem:[%s1043_s1 + $0xc0] sm:$0xff]  ;;  %v45_v16 = vld [vmem:[%s1043_s1 + $0xb8] sm:$0xff] }
   0x6   :  { %258 = vmatpush1.msra.mxu1 %v114_v7  ;;  %v111_v13 = vld [vmem:[%s1043_s1 + $0x2c8] sm:$0xff]  ;;  %188 = vmatprep.subr.mxu0 %v49_v8  ;;  %v110_v15 = vld [vmem:[%s1043_s1 + $0x2c0] sm:$0xff]  ;;  %v109_v17 = vld [vmem:[%s1043_s1 + $0x2b8] sm:$0xff] }
   0x7   :  { %259 = vmatprep.subr.mxu1 %v113_v9  ;;  %189 = vmatpush1.msra.mxu0 %v48_v10  ;;  %v44_v18 = vld [vmem:[%s1043_s1 + $0xb0] sm:$0xff]  ;;  %v43_v20 = vld [vmem:[%s1043_s1 + $0xa8] sm:$0xff]  ;;  %v42_v22 = vld [vmem:[%s1043_s1 + $0xa0] sm:$0xff] }
   0x8   :  { %260 = vmatpush1.msra.mxu1 %v112_v11  ;;  %190 = vmatprep.subr.mxu0 %v47_v12  ;;  %v108_v19 = vld [vmem:[%s1043_s1 + $0x2b0] sm:$0xff]  ;;  %v107_v21 = vld [vmem:[%s1043_s1 + $0x2a8] sm:$0xff]  ;;  %v106_v23 = vld [vmem:[%s1043_s1 + $0x2a0] sm:$0xff] }
   0x9   :  { %261 = vmatprep.subr.mxu1 %v111_v13  ;;  %191 = vmatpush1.msra.mxu0 %v46_v14  ;;  %v41_v24 = vld [vmem:[%s1043_s1 + $0x98] sm:$0xff]  ;;  %v40_v26 = vld [vmem:[%s1043_s1 + $0x90] sm:$0xff]  ;;  %v39_v28 = vld [vmem:[%s1043_s1 + $0x88] sm:$0xff] }
   0xa   :  { %262 = vmatpush1.msra.mxu1 %v110_v15  ;;  %192 = vmatprep.subr.mxu0 %v45_v16  ;;  %v105_v25 = vld [vmem:[%s1043_s1 + $0x298] sm:$0xff]  ;;  %v104_v27 = vld [vmem:[%s1043_s1 + $0x290] sm:$0xff]  ;;  %v103_v29 = vld [vmem:[%s1043_s1 + $0x288] sm:$0xff] }
   0xb   :  { %263 = vmatprep.subr.mxu1 %v109_v17  ;;  %193 = vmatpush1.msra.mxu0 %v44_v18  ;;  %v38_v30 = vld [vmem:[%s1043_s1 + $0x80] sm:$0xff]  ;;  %v37_v32 = vld [vmem:[%s1043_s1 + $0x78] sm:$0xff]  ;;  %v36_v34 = vld [vmem:[%s1043_s1 + $0x70] sm:$0xff] }
   0xc   :  { %264 = vmatpush1.msra.mxu1 %v108_v19  ;;  %194 = vmatprep.subr.mxu0 %v43_v20  ;;  %v102_v31 = vld [vmem:[%s1043_s1 + $0x280] sm:$0xff]  ;;  %v101_v33 = vld [vmem:[%s1043_s1 + $0x278] sm:$0xff]  ;;  %v100_v35 = vld [vmem:[%s1043_s1 + $0x270] sm:$0xff] }
   0xd   :  { %265 = vmatprep.subr.mxu1 %v107_v21  ;;  %195 = vmatpush1.msra.mxu0 %v42_v22  ;;  %v35_v36 = vld [vmem:[%s1043_s1 + $0x68] sm:$0xff]  ;;  %v34_v38 = vld [vmem:[%s1043_s1 + $0x60] sm:$0xff]  ;;  %v33_v40 = vld [vmem:[%s1043_s1 + $0x58] sm:$0xff] }
   0xe   :  { %266 = vmatpush1.msra.mxu1 %v106_v23  ;;  %196 = vmatprep.subr.mxu0 %v41_v24  ;;  %v99_v37 = vld [vmem:[%s1043_s1 + $0x268] sm:$0xff]  ;;  %v98_v39 = vld [vmem:[%s1043_s1 + $0x260] sm:$0xff]  ;;  %v97_v41 = vld [vmem:[%s1043_s1 + $0x258] sm:$0xff] }
   0xf   :  { %267 = vmatprep.subr.mxu1 %v105_v25  ;;  %197 = vmatpush1.msra.mxu0 %v40_v26  ;;  %v32_v42 = vld [vmem:[%s1043_s1 + $0x50] sm:$0xff]  ;;  %v31_v44 = vld [vmem:[%s1043_s1 + $0x48] sm:$0xff]  ;;  %v30_v46 = vld [vmem:[%s1043_s1 + $0x40] sm:$0xff] }
  0x10   :  { %268 = vmatpush1.msra.mxu1 %v104_v27  ;;  %198 = vmatprep.subr.mxu0 %v39_v28  ;;  %v96_v43 = vld [vmem:[%s1043_s1 + $0x250] sm:$0xff]  ;;  %v95_v45 = vld [vmem:[%s1043_s1 + $0x248] sm:$0xff]  ;;  %v94_v47 = vld [vmem:[%s1043_s1 + $0x240] sm:$0xff] }
  0x11   :  { %269 = vmatprep.subr.mxu1 %v103_v29  ;;  %199 = vmatpush1.msra.mxu0 %v38_v30  ;;  %v29_v48 = vld [vmem:[%s1043_s1 + $0x38] sm:$0xff]  ;;  %v28_v50 = vld [vmem:[%s1043_s1 + $0x30] sm:$0xff]  ;;  %v27_v52 = vld [vmem:[%s1043_s1 + $0x28] sm:$0xff]  ;;  %v152_v30 = vlaneseq }
  0x12   :  { %270 = vmatpush1.msra.mxu1 %v102_v31  ;;  %200 = vmatprep.subr.mxu0 %v37_v32  ;;  %v93_v49 = vld [vmem:[%s1043_s1 + $0x238] sm:$0xff]  ;;  %v92_v51 = vld [vmem:[%s1043_s1 + $0x230] sm:$0xff]  ;;  %v91_v53 = vld [vmem:[%s1043_s1 + $0x228] sm:$0xff]  ;;  %v513_v31 = vmov 1983009808  }
  0x13   :  { %271 = vmatprep.subr.mxu1 %v101_v33  ;;  %201 = vmatpush1.msra.mxu0 %v36_v34  ;;  %v26_v54 = vld [vmem:[%s1043_s1 + $0x20] sm:$0xff]  ;;  %v25_v56 = vld [vmem:[%s1043_s1 + $0x18] sm:$0xff]  ;;  %v24_v58 = vld [vmem:[%s1043_s1 + $0x10] sm:$0xff]  ;;  %v165_v32 = vunpack.c.l.s4 %v513_v31 }
  0x14   :  { %272 = vmatpush1.msra.mxu1 %v100_v35  ;;  %202 = vmatprep.subr.mxu0 %v35_v36  ;;  %v90_v55 = vld [vmem:[%s1043_s1 + $0x220] sm:$0xff]  ;;  %v89_v57 = vld [vmem:[%s1043_s1 + $0x218] sm:$0xff]  ;;  %v88_v59 = vld [vmem:[%s1043_s1 + $0x210] sm:$0xff] }
  0x15   :  { %273 = vmatprep.subr.mxu1 %v99_v37  ;;  %203 = vmatpush1.msra.mxu0 %v34_v38  ;;  %v23_v60 = vld [vmem:[%s1043_s1 + $0x8] sm:$0xff]  ;;  %v22_v62 = vld [vmem:[%s1043_s1] sm:$0xff]  ;;  %v85_v0 = vld [vmem:[%s1043_s1 + $0x1f8] sm:$0xff] }
  0x16   :  { %274 = vmatpush1.msra.mxu1 %v98_v39  ;;  %204 = vmatprep.subr.mxu0 %v33_v40  ;;  %v87_v61 = vld [vmem:[%s1043_s1 + $0x208] sm:$0xff]  ;;  %v86_v63 = vld [vmem:[%s1043_s1 + $0x200] sm:$0xff]  ;;  %v149_v1 = vld [vmem:[%s1043_s1 + $0x3f8] sm:$0xff] }
  0x17   :  { %275 = vmatprep.subr.mxu1 %v97_v41  ;;  %205 = vmatpush1.msra.mxu0 %v32_v42  ;;  %v84_v2 = vld [vmem:[%s1043_s1 + $0x1f0] sm:$0xff]  ;;  %v83_v4 = vld [vmem:[%s1043_s1 + $0x1e8] sm:$0xff]  ;;  %v82_v6 = vld [vmem:[%s1043_s1 + $0x1e0] sm:$0xff]  ;;  %v851_v41 = vshrl.u32 %v152_v30, 7  ;;  %v166_v42 = vunpack.c.0.s8 %v165_v32 }
  0x18   :  { %276 = vmatpush1.msra.mxu1 %v96_v43  ;;  %206 = vmatprep.subr.mxu0 %v31_v44  ;;  %v148_v3 = vld [vmem:[%s1043_s1 + $0x3f0] sm:$0xff]  ;;  %v147_v5 = vld [vmem:[%s1043_s1 + $0x3e8] sm:$0xff]  ;;  %v146_v7 = vld [vmem:[%s1043_s1 + $0x3e0] sm:$0xff] }
  0x19   :  { %277 = vmatprep.subr.mxu1 %v95_v45  ;;  %207 = vmatpush1.msra.mxu0 %v30_v46  ;;  %v81_v8 = vld [vmem:[%s1043_s1 + $0x1d8] sm:$0xff]  ;;  %v80_v10 = vld [vmem:[%s1043_s1 + $0x1d0] sm:$0xff]  ;;  %v79_v12 = vld [vmem:[%s1043_s1 + $0x1c8] sm:$0xff] }
  0x1a   :  { %278 = vmatpush1.msra.mxu1 %v94_v47  ;;  %208 = vmatprep.subr.mxu0 %v29_v48  ;;  %v145_v9 = vld [vmem:[%s1043_s1 + $0x3d8] sm:$0xff]  ;;  %v144_v11 = vld [vmem:[%s1043_s1 + $0x3d0] sm:$0xff]  ;;  %v143_v13 = vld [vmem:[%s1043_s1 + $0x3c8] sm:$0xff] }
  0x1b   :  { %279 = vmatprep.subr.mxu1 %v93_v49  ;;  %209 = vmatpush1.msra.mxu0 %v28_v50  ;;  %v78_v14 = vld [vmem:[%s1043_s1 + $0x1c0] sm:$0xff]  ;;  %v77_v16 = vld [vmem:[%s1043_s1 + $0x1b8] sm:$0xff]  ;;  %v76_v18 = vld [vmem:[%s1043_s1 + $0x1b0] sm:$0xff] }
  0x1c   :  { %280 = vmatpush1.msra.mxu1 %v92_v51  ;;  %210 = vmatprep.subr.mxu0 %v27_v52  ;;  %v142_v15 = vld [vmem:[%s1043_s1 + $0x3c0] sm:$0xff]  ;;  %v141_v17 = vld [vmem:[%s1043_s1 + $0x3b8] sm:$0xff]  ;;  %v140_v19 = vld [vmem:[%s1043_s1 + $0x3b0] sm:$0xff] }
  0x1d   :  { %281 = vmatprep.subr.mxu1 %v91_v53  ;;  %211 = vmatpush1.msra.mxu0 %v26_v54  ;;  %v75_v20 = vld [vmem:[%s1043_s1 + $0x1a8] sm:$0xff]  ;;  %v74_v22 = vld [vmem:[%s1043_s1 + $0x1a0] sm:$0xff]  ;;  %v73_v24 = vld [vmem:[%s1043_s1 + $0x198] sm:$0xff] }
  0x1e   :  { %282 = vmatpush1.msra.mxu1 %v90_v55  ;;  %212 = vmatprep.subr.mxu0 %v25_v56  ;;  %v139_v21 = vld [vmem:[%s1043_s1 + $0x3a8] sm:$0xff]  ;;  %v138_v23 = vld [vmem:[%s1043_s1 + $0x3a0] sm:$0xff]  ;;  %v137_v25 = vld [vmem:[%s1043_s1 + $0x398] sm:$0xff] }
  0x1f   :  { %283 = vmatprep.subr.mxu1 %v89_v57  ;;  %213 = vmatpush1.msra.mxu0 %v24_v58  ;;  %v72_v26 = vld [vmem:[%s1043_s1 + $0x190] sm:$0xff]  ;;  %v71_v28 = vld [vmem:[%s1043_s1 + $0x188] sm:$0xff]  ;;  %v70_v33 = vld [vmem:[%s1043_s1 + $0x180] sm:$0xff] }
  0x20   :  { %284 = vmatpush1.msra.mxu1 %v88_v59  ;;  %214 = vmatprep.subr.mxu0 %v23_v60  ;;  %v136_v27 = vld [vmem:[%s1043_s1 + $0x390] sm:$0xff]  ;;  %v135_v29 = vld [vmem:[%s1043_s1 + $0x388] sm:$0xff]  ;;  %v134_v34 = vld [vmem:[%s1043_s1 + $0x380] sm:$0xff] }
  0x21   :  { %285 = vmatprep.subr.mxu1 %v87_v61  ;;  %215 = vmatpush1.msra.mxu0 %v22_v62  ;;  %v69_v35 = vld [vmem:[%s1043_s1 + $0x178] sm:$0xff]  ;;  %v68_v37 = vld [vmem:[%s1043_s1 + $0x170] sm:$0xff]  ;;  %v67_v39 = vld [vmem:[%s1043_s1 + $0x168] sm:$0xff] }
  0x22   :  { %286 = vmatpush1.msra.mxu1 %v86_v63  ;;  %216 = vmatprep.subr.mxu0 %v85_v0  ;;  %v133_v36 = vld [vmem:[%s1043_s1 + $0x378] sm:$0xff]  ;;  %v132_v38 = vld [vmem:[%s1043_s1 + $0x370] sm:$0xff]  ;;  %v131_v40 = vld [vmem:[%s1043_s1 + $0x368] sm:$0xff] }
  0x23   :  { %287 = vmatprep.subr.mxu1 %v149_v1  ;;  %217 = vmatpush2.msra.mxu0 %v84_v2  ;;  %v66_v43 = vld [vmem:[%s1043_s1 + $0x160] sm:$0xff]  ;;  %v65_v45 = vld [vmem:[%s1043_s1 + $0x158] sm:$0xff] }
  0x24   :  { %288 = vmatpush2.msra.mxu1 %v148_v3  ;;  %218 = vmatprep.subr.mxu0 %v83_v4  ;;  %v130_v44 = vld [vmem:[%s1043_s1 + $0x360] sm:$0xff]  ;;  %v129_v46 = vld [vmem:[%s1043_s1 + $0x358] sm:$0xff] }
  0x25   :  { %289 = vmatprep.subr.mxu1 %v147_v5  ;;  %219 = vmatpush2.msra.mxu0 %v82_v6  ;;  %v21_v47 = vld [vmem:[%s1042_s0] sm:$0xff] }
  0x26   :  { %290 = vmatpush2.msra.mxu1 %v146_v7  ;;  %220 = vmatprep.subr.mxu0 %v81_v8 }
  0x27   :  { %291 = vmatprep.subr.mxu1 %v145_v9  ;;  %221 = vmatpush2.msra.mxu0 %v80_v10 }
  0x28   :  { %292 = vmatpush2.msra.mxu1 %v144_v11  ;;  %222 = vmatprep.subr.mxu0 %v79_v12 }
  0x29   :  { %293 = vmatprep.subr.mxu1 %v143_v13  ;;  %223 = vmatpush2.msra.mxu0 %v78_v14 }
  0x2a   :  { %294 = vmatpush2.msra.mxu1 %v142_v15  ;;  %224 = vmatprep.subr.mxu0 %v77_v16 }
  0x2b   :  { %295 = vmatprep.subr.mxu1 %v141_v17  ;;  %225 = vmatpush2.msra.mxu0 %v76_v18 }
  0x2c   :  { %296 = vmatpush2.msra.mxu1 %v140_v19  ;;  %226 = vmatprep.subr.mxu0 %v75_v20 }
  0x2d   :  { %297 = vmatprep.subr.mxu1 %v139_v21  ;;  %227 = vmatpush2.msra.mxu0 %v74_v22 }
  0x2e   :  { %298 = vmatpush2.msra.mxu1 %v138_v23  ;;  %228 = vmatprep.subr.mxu0 %v73_v24 }
  0x2f   :  { %299 = vmatprep.subr.mxu1 %v137_v25  ;;  %229 = vmatpush2.msra.mxu0 %v72_v26 }
  0x30   :  { %300 = vmatpush2.msra.mxu1 %v136_v27  ;;  %230 = vmatprep.subr.mxu0 %v71_v28 }
  0x31   :  { %301 = vmatprep.subr.mxu1 %v135_v29  ;;  %231 = vmatpush2.msra.mxu0 %v70_v33 }
  0x32   :  { %302 = vmatpush2.msra.mxu1 %v134_v34  ;;  %232 = vmatprep.subr.mxu0 %v69_v35 }
  0x33   :  { %303 = vmatprep.subr.mxu1 %v133_v36  ;;  %233 = vmatpush2.msra.mxu0 %v68_v37 }
  0x34   :  { %304 = vmatpush2.msra.mxu1 %v132_v38 }
  0x35   :  { %10 = vsyncpa [#allocation3], 0  ;;  %234 = vmatprep.subr.mxu0 %v67_v39  ;;  %305 = vmatprep.subr.mxu1 %v131_v40  ;;  %v64_v48 = vld [vmem:[%s1043_s1 + $0x150] sm:$0xff]  ;;  %v63_v50 = vld [vmem:[%s1043_s1 + $0x148] sm:$0xff]  ;;  %v169_v52 = vsub.s32 %v166_v42, %v851_v41  ;;  %v163_v55 = vcombine.high %v21_v47, %v21_v47  ;;  %s514_s10 = smov [#allocation2]  }
  0x36   :  { %v128_v49 = vld [vmem:[%s1043_s1 + $0x350] sm:$0xff]  ;;  %235 = vmatpush2.msra.mxu0 %v66_v43  ;;  %306 = vmatpush2.msra.mxu1 %v130_v44  ;;  %v127_v51 = vld [vmem:[%s1043_s1 + $0x348] sm:$0xff]  ;;  %v62_v53 = vld [vmem:[%s1043_s1 + $0x140] sm:$0xff]  ;;  %s444_s11 = sshll.u32 %s514_s10, 4  ;;  %s445_s11 = int_to_ptr.vmem [resolvable:$true] %s444_s11 }
  0x37   :  { %236 = vmatprep.subr.mxu0 %v65_v45  ;;  %307 = vmatprep.subr.mxu1 %v129_v46  ;;  %v126_v54 = vld [vmem:[%s1043_s1 + $0x340] sm:$0xff]  ;;  %v61_v56 = vld [vmem:[%s1043_s1 + $0x138] sm:$0xff]  ;;  %v60_v58 = vld [vmem:[%s1043_s1 + $0x130] sm:$0xff]  ;;  %v170_v62 = vrot.slane %v21_v47, %v169_v52  ;;  %v177_v1 = vrot.slane %v163_v55, %v169_v52  ;;  %v154_v45 = vsub.s32 0, %v851_v41  ;;  %v158_v47 = vsub.s32 1, %v851_v41  ;;  %s491_s12 = scalar_lea.vmem %s445_s11, 32  ;;  %p496_p1 = scmp.lt.s32.totalorder %s445_s11, %s445_s11 }
  0x38   :  { %237 = vmatpush2.msra.mxu0 %v64_v48  ;;  %308 = vmatpush2.msra.mxu1 %v128_v49  ;;  %v125_v57 = vld [vmem:[%s1043_s1 + $0x338] sm:$0xff]  ;;  %v124_v59 = vld [vmem:[%s1043_s1 + $0x330] sm:$0xff]  ;;  %v59_v60 = vld [vmem:[%s1043_s1 + $0x128] sm:$0xff]  ;;  %p492_p0 = scmp.ne.s32.totalorder %s445_s11, %s491_s12  ;;  %p497_p2 = scmp.lt.s32.totalorder %s491_s12, %s491_s12 }
  0x39   :  { %238 = vmatprep.subr.mxu0 %v63_v50  ;;  %309 = vmatprep.subr.mxu1 %v127_v51  ;;  %v123_v61 = vld [vmem:[%s1043_s1 + $0x328] sm:$0xff]  ;;  %v58_v63 = vld [vmem:[%s1043_s1 + $0x120] sm:$0xff]  ;;  %v57_v2 = vld [vmem:[%s1043_s1 + $0x118] sm:$0xff]  ;;  %v178_v8 = vcombine.high %v170_v62, %v170_v62  ;;  %v179_v10 = vcombine.high %v177_v1, %v177_v1 }
  0x3a   :  { %239 = vmatpush2.msra.mxu0 %v62_v53  ;;  %310 = vmatpush2.msra.mxu1 %v126_v54  ;;  %v122_v0 = vld [vmem:[%s1043_s1 + $0x320] sm:$0xff]  ;;  %v121_v3 = vld [vmem:[%s1043_s1 + $0x318] sm:$0xff]  ;;  %v56_v4 = vld [vmem:[%s1043_s1 + $0x110] sm:$0xff]  ;;  %p498_p3 = por %p497_p2, %p496_p1 }
  0x3b   :  { %240 = vmatprep.subr.mxu0 %v61_v56  ;;  %311 = vmatprep.subr.mxu1 %v125_v57  ;;  %v120_v5 = vld [vmem:[%s1043_s1 + $0x310] sm:$0xff]  ;;  %v55_v6 = vld [vmem:[%s1043_s1 + $0x108] sm:$0xff]  ;;  %v54_v9 = vld [vmem:[%s1043_s1 + $0x100] sm:$0xff] }
  0x3c   :  { %241 = vmatpush2.msra.mxu0 %v60_v58  ;;  %312 = vmatpush2.msra.mxu1 %v124_v59  ;;  %v119_v7 = vld [vmem:[%s1043_s1 + $0x308] sm:$0xff]  ;;  %v118_v11 = vld [vmem:[%s1043_s1 + $0x300] sm:$0xff]  ;;  %v359_v12 = vld [vmem:[%s1045_s3 + $0xf8] sm:$0xff]  ;;  %p499_p4 = pnand %p498_p3, %p492_p0 }
  0x3d   :  { %242 = vmatprep.subr.mxu0 %v59_v60  ;;  %313 = vmatprep.subr.mxu1 %v123_v61  ;;  %v343_v13 = vld [vmem:[%s1045_s3 + $0x78] sm:$0xff]  ;;  %v358_v14 = vld [vmem:[%s1045_s3 + $0xf0] sm:$0xff]  ;;  %v357_v16 = vld [vmem:[%s1045_s3 + $0xe8] sm:$0xff] }
  0x3e   :  { %243 = vmatpush2.msra.mxu0 %v58_v63  ;;  %314 = vmatpush2.msra.mxu1 %v122_v0  ;;  %v342_v15 = vld [vmem:[%s1045_s3 + $0x70] sm:$0xff]  ;;  %v341_v17 = vld [vmem:[%s1045_s3 + $0x68] sm:$0xff]  ;;  %v356_v18 = vld [vmem:[%s1045_s3 + $0xe0] sm:$0xff] }
  0x3f   :  { %244 = vmatprep.subr.mxu0 %v57_v2  ;;  %315 = vmatprep.subr.mxu1 %v121_v3  ;;  %v340_v19 = vld [vmem:[%s1045_s3 + $0x60] sm:$0xff]  ;;  %v355_v20 = vld [vmem:[%s1045_s3 + $0xd8] sm:$0xff]  ;;  %v354_v22 = vld [vmem:[%s1045_s3 + $0xd0] sm:$0xff] }
  0x40   :  { %245 = vmatpush2.msra.mxu0 %v56_v4  ;;  %316 = vmatpush2.msra.mxu1 %v120_v5  ;;  %v339_v21 = vld [vmem:[%s1045_s3 + $0x58] sm:$0xff]  ;;  %v338_v23 = vld [vmem:[%s1045_s3 + $0x50] sm:$0xff]  ;;  %v353_v24 = vld [vmem:[%s1045_s3 + $0xc8] sm:$0xff] }
  0x41   :  { %246 = vmatprep.subr.mxu0 %v55_v6  ;;  %317 = vmatprep.subr.mxu1 %v119_v7  ;;  %v337_v25 = vld [vmem:[%s1045_s3 + $0x48] sm:$0xff]  ;;  %v352_v26 = vld [vmem:[%s1045_s3 + $0xc0] sm:$0xff]  ;;  %v351_v28 = vld [vmem:[%s1045_s3 + $0xb8] sm:$0xff] }
  0x42   :  { %247 = vmatpush2.msra.mxu0 %v54_v9  ;;  %248 = vmatprep.mubr.f32.mxu0 %v178_v8  ;;  %v336_v27 = vld [vmem:[%s1045_s3 + $0x40] sm:$0xff]  ;;  %v335_v29 = vld [vmem:[%s1045_s3 + $0x38] sm:$0xff]  ;;  %v350_v30 = vld [vmem:[%s1045_s3 + $0xb0] sm:$0xff] }
  0x43   :  { %318 = vmatpush2.msra.mxu1 %v118_v11  ;;  %319 = vmatprep.mubr.f32.mxu1 %v179_v10  ;;  %v334_v31 = vld [vmem:[%s1045_s3 + $0x30] sm:$0xff]  ;;  %v349_v32 = vld [vmem:[%s1045_s3 + $0xa8] sm:$0xff]  ;;  %v348_v34 = vld [vmem:[%s1045_s3 + $0xa0] sm:$0xff] }
  0x44   :  { %249 = vmatmul.mubr.f32.vlgmr.msra.gmra.mxu0 %v170_v62  ;;  %320 = vmatmul.mubr.f32.vlgmr.msra.gmra.mxu1 %v177_v1  ;;  %v333_v33 = vld [vmem:[%s1045_s3 + $0x28] sm:$0xff]  ;;  %v332_v35 = vld [vmem:[%s1045_s3 + $0x20] sm:$0xff]  ;;  %v347_v36 = vld [vmem:[%s1045_s3 + $0x98] sm:$0xff] }
  0x45   :  { %453 = vmatprep.subr.mxu0 %v359_v12  ;;  %v331_v37 = vld [vmem:[%s1045_s3 + $0x18] sm:$0xff]  ;;  %v346_v38 = vld [vmem:[%s1045_s3 + $0x90] sm:$0xff]  ;;  %v345_v40 = vld [vmem:[%s1045_s3 + $0x88] sm:$0xff] }
  0x46   :  { %454 = vmatpush3.msra.mxu0 %v343_v13  ;;  %v330_v39 = vld [vmem:[%s1045_s3 + $0x10] sm:$0xff]  ;;  %v329_v42 = vld [vmem:[%s1045_s3 + $0x8] sm:$0xff]  ;;  %v344_v43 = vld [vmem:[%s1045_s3 + $0x80] sm:$0xff] }
  0x47   :  { %455 = vmatprep.subr.mxu0 %v358_v14  ;;  %v328_v44 = vld [vmem:[%s1045_s3] sm:$0xff] }
  0x48   :  { %456 = vmatpush3.msra.mxu0 %v342_v15  ;;  %v150_v46 = vld [vmem:[%s1044_s2] sm:$0x3] }
  0x49   :  { %457 = vmatprep.subr.mxu0 %v357_v16  ;;  %v155_v48 = vrot.slane %v150_v46, %v154_v45  ;;  %v159_v49 = vrot.slane %v150_v46, %v158_v47  ;;  %v452_v41 = vld [vmem:[%s1046_s4] ss:$0 sm:$0xff] }
  0x4a   :  { %458 = vmatpush3.msra.mxu0 %v341_v17 }
  0x4b   :  { %459 = vmatprep.subr.mxu0 %v356_v18 }
  0x4c   :  { %460 = vmatpush3.msra.mxu0 %v340_v19 }
  0x4d   :  { %461 = vmatprep.subr.mxu0 %v355_v20 }
  0x4e   :  { %462 = vmatpush3.msra.mxu0 %v339_v21 }
  0x4f   :  { %463 = vmatprep.subr.mxu0 %v354_v22 }
  0x50   :  { %464 = vmatpush3.msra.mxu0 %v338_v23 }
  0x51   :  { %465 = vmatprep.subr.mxu0 %v353_v24 }
  0x52   :  { %466 = vmatpush3.msra.mxu0 %v337_v25 }
  0x53   :  { %467 = vmatprep.subr.mxu0 %v352_v26 }
  0x54   :  { %468 = vmatpush3.msra.mxu0 %v336_v27 }
  0x55   :  { %469 = vmatprep.subr.mxu0 %v351_v28 }
  0x56   :  { %470 = vmatpush3.msra.mxu0 %v335_v29 }
  0x57   :  { %471 = vmatprep.subr.mxu0 %v350_v30 }
  0x58   :  { %472 = vmatpush3.msra.mxu0 %v334_v31 }
  0x59   :  { %473 = vmatprep.subr.mxu0 %v349_v32 }
  0x5a   :  { %474 = vmatpush3.msra.mxu0 %v333_v33 }
  0x5b   :  { %475 = vmatprep.subr.mxu0 %v348_v34 }
  0x5c   :  { %476 = vmatpush3.msra.mxu0 %v332_v35 }
  0x5d   :  { %477 = vmatprep.subr.mxu0 %v347_v36 }
  0x5e   :  { %478 = vmatpush3.msra.mxu0 %v331_v37 }
  0x5f   :  { %479 = vmatprep.subr.mxu0 %v346_v38 }
  0x60   :  { %480 = vmatpush3.msra.mxu0 %v330_v39 }
  0x61   :  { %481 = vmatprep.subr.mxu0 %v345_v40 }
  0x62   :  { %482 = vmatpush3.msra.mxu0 %v329_v42 }
  0x63   :  { %483 = vmatprep.subr.mxu0 %v344_v43 }
  0x64   :  { %484 = vmatpush3.msra.mxu0 %v328_v44 }
 0x104   :  { %v250_v50 = vpop.f32.mrf.mxu0  ;;  %v321_v51 = vpop.f32.mrf.mxu1 }
 0x105   :  { %v251_v52 = vadd.f32 %v250_v50, %v155_v48 }
 0x106   :  { %v252_v53 = vpop.f32.mrf.mxu0  ;;  %v323_v56 = vpop.f32.mrf.mxu1 }
 0x107   :  { %v253_v54 = vadd.f32 %v252_v53, %v159_v49  ;;  %v322_v55 = vadd.f32 %v321_v51, %v251_v52 }
 0x109   :  { %v324_v57 = vadd.f32 %v323_v56, %v253_v54  ;;  %v326_v59 = vmax.f32 %v322_v55, 0.0 }
 0x10b   :  { %v327_v58 = vmax.f32 %v324_v57, 0.0 }
 0x10d   :  { %431 = vmatprep.mubr.f32.mxu0 %v327_v58 }
 0x10e   :  { %432 = vmatmul.mubr.f32.vlgmr.msra.gmra.mxu0 %v326_v59 }
 0x1ce   :  { %v485_v60 = vpop.f32.mrf.mxu0 }
 0x1d0   :  { %v486_v61 = vpop.f32.mrf.mxu0 }
 0x1d1   :  { %v487_v62 = vadd.f32 %v486_v61, %v485_v60 }
 0x1d3   :  { %v434_v63 = vadd.f32 %v487_v62, %v452_v41 }
 0x1d5   :  { %437 = vst [vmem:[#allocation2] sm:$0x3] %v434_v63 }
 0x1d6   :  { %502 = shalt.err (!%p499_p4)
}
 0x1d7   :  { %447 = dma.vmem_to_hbm [thread:$0]  %s445_s11, 32, %s1047_s5, [#allocation3]  }
 0x1d8   :  { %511 = dma.done.wait [#allocation3], 32  }
 0x1d9   :  { %512 = vsyncadd [#allocation3], 4294967264 }
 0x1da   :  { %451 = vsyncpa [#allocation3], 1 }

</bundles_post_ra>
